<compile_context>
chip_gen: v6e
topology: v6e:2x2x1
jax: 0.10.0
libtpu: 0.0.40
codegen_flags: <defaults>
</compile_context>

<pallas_src>
import math
import functools

import jax
import jax.numpy as jnp
from jax import lax
from jax.experimental import pallas as pl
from jax.experimental.pallas import tpu as pltpu

LANE = 128   # TPU lane width (last dim)
SUB = 8      # f32 sublane width
PADW = 16    # halo-scratch left pad = one packed bf16 sublane tile (aligned interior)


def _gelu(x, approx=False):
    # PyTorch nn.GELU() default = exact erf GELU.  The erf polynomial is f32 VALU work
    # regardless of input dtype, so evaluate it in f32.  approx=True (opt-in) uses the
    # tanh form so the transcendental lands on the EUP slot instead of the VALU.
    xf = x.astype(jnp.float32)
    if approx:
        inner = 0.7978845608028654 * (xf + 0.044715 * (xf * xf * xf))
        return 0.5 * xf * (1.0 + jnp.tanh(inner))
    return 0.5 * xf * (1.0 + lax.erf(xf * 0.7071067811865476))


def _round_up(x, m):
    return (x + m - 1) // m * m


def _fold_bn(gamma, beta, mean, var, eps=1e-5):
    scale = gamma / jnp.sqrt(var + eps)
    return scale, beta - mean * scale


@functools.lru_cache(maxsize=None)
def _tpu_vmem_limit_bytes():
    try:
        cap = int(pltpu.get_tpu_info().vmem_capacity_bytes)
    except Exception:
        cap = 128 * 1024 * 1024
    # <= ~40 MiB on v7x (64 MiB/TC); 80 MiB on v5e/v6e (128 MiB).
    return int(min(cap * 5 // 8, 80 * 1024 * 1024))


@functools.lru_cache(maxsize=None)
def _has_bf16_vpu():
    # v6e/v7x have a bf16 VALU; v5e and older do not (keep the dw MAC in f32 there).
    try:
        kind = jax.devices()[0].device_kind.lower()
    except Exception:
        return True
    return not any(t in kind for t in ("v2", "v3", "v4", "v5"))


@functools.lru_cache(maxsize=None)
def _supports_single_buffered_consts():
    """One-time probe: does pl.BlockSpec(pipeline_mode=pl.Buffered(1)) lower + run?"""
    try:
        cspec = pl.BlockSpec((8, 128), lambda i: (0, 0), pipeline_mode=pl.Buffered(1))

        def probe(c_ref, x_ref, o_ref):
            o_ref[...] = x_ref[...] + c_ref[...]

        out = pl.pallas_call(
            probe,
            out_shape=jax.ShapeDtypeStruct((16, 128), jnp.float32),
            grid=(2,),
            in_specs=[cspec, pl.BlockSpec((8, 128), lambda i: (i, 0))],
            out_specs=pl.BlockSpec((8, 128), lambda i: (i, 0)),
        )(jnp.ones((8, 128), jnp.float32), jnp.ones((16, 128), jnp.float32))
        out = jax.block_until_ready(out)
        return bool(jnp.all(out == 2.0))
    except Exception:
        return False


def _pick_row_block(H, W_p, row_block=None):
    if row_block is not None:
        if H % row_block != 0:
            raise ValueError("row_block must divide H")
        return int(row_block)
    target = max(1, 512 // max(W_p, 1))   # aim for >= ~512 flattened rows per tile
    if target >= H:
        return H
    divisors = [d for d in range(1, H + 1) if H % d == 0 and d <= target]
    best = max(divisors)
    # degenerate case (e.g. prime H): one resident tile beats many tiny ones
    return best if best >= max(2, target // 4) else H


def _mlp_dwbn_kernel(xm_ref, xt_ref, xb_ref, w1_ref, b1_ref, dwk_ref, bdw_ref,
                     w2_ref, b2_ref, o_ref, hp_ref, *, W_valid, approx_gelu):
    TR, W_p, Cin_p = xm_ref.shape[1], xm_ref.shape[2], xm_ref.shape[3]
    Chid = w1_ref.shape[1]
    t = pl.program_id(1)
    n_t = pl.num_programs(1)
    stage_dt = hp_ref.dtype           # bf16 staging (halves scratch + vst/vld traffic)
    mac_dt = dwk_ref.dtype            # bf16 on v6e/v7x, f32 on v5e

    b1 = b1_ref[0]                    # (Chid,) f32

    def fc1(x2d):                     # 1x1 conv (BN1 folded) + GELU :: bf16 MXU, f32 acc
        h = jnp.dot(x2d, w1_ref[...], preferred_element_type=jnp.float32) + b1
        return _gelu(h, approx_gelu).astype(stage_dt)

    # fc1 for the TR tile rows plus the two 1-row halos.  Halos are recomputed per tile
    # (clamped single-row fetches) so row tiles stay independent -> both axes parallel.
    h_main = fc1(xm_ref[0].reshape(TR * W_p, Cin_p)).reshape(TR, W_p, Chid)
    h_top = fc1(xt_ref[0, 0])         # (W_p, Chid): image row above the tile
    h_bot = fc1(xb_ref[0, 0])         # image row below the tile
    # at the true image top/bottom the halo row is the dw conv's zero padding
    h_top = jnp.where(t == 0, jnp.zeros_like(h_top), h_top)
    h_bot = jnp.where(t == n_t - 1, jnp.zeros_like(h_bot), h_bot)

    # ---- stage into the bf16 halo scratch (interior starts at PADW: aligned stores) ---
    hp_ref[0, PADW:PADW + W_p, :] = h_top
    hp_ref[1:TR + 1, PADW:PADW + W_p, :] = h_main
    hp_ref[TR + 1, PADW:PADW + W_p, :] = h_bot
    # zero only the halo cells the 3x3 taps actually read: one column on the left and
    # the columns at/right of the true image edge (this also neutralises padded-W
    # columns, replacing the old full-tile jnp.where(col < W_valid) select pass).
    hp_ref[:, PADW - 1:PADW, :] = jnp.zeros((TR + 2, 1, Chid), stage_dt)
    hp_ref[:, PADW + W_valid:PADW + W_p + 1, :] = jnp.zeros(
        (TR + 2, W_p + 1 - W_valid, Chid), stage_dt)

    # ---- depthwise 3x3 (BN2 folded into taps) + GELU ----
    # TODO(synk): confirm the kw=0/2 (sublane-misaligned) slab reads lower to rotates.
    k = dwk_ref[...]                  # (9, Chid) taps in the MAC dtype
    parts = []
    for kw in range(3):               # 3 partial accumulators -> ILP across VALU slots
        c0 = PADW - 1 + kw
        s = hp_ref[:, c0:c0 + W_p, :]
        if s.dtype != mac_dt:
            s = s.astype(mac_dt)      # f32 MAC path (v5e)
        parts.append(s[0:TR] * k[kw]
                     + s[1:TR + 1] * k[kw + 3]
                     + s[2:TR + 2] * k[kw + 6])
    pre = (parts[0].astype(jnp.float32) + parts[1].astype(jnp.float32)
           + parts[2].astype(jnp.float32)) + bdw_ref[0]
    h2 = _gelu(pre, approx_gelu).astype(jnp.bfloat16).reshape(TR * W_p, Chid)

    # ---- fc2 (1x1 conv, BN3 folded) + GELU :: bf16 MXU, f32 accumulation ----
    y = jnp.dot(h2, w2_ref[...], preferred_element_type=jnp.float32) + b2_ref[0]
    o_ref[0] = _gelu(y, approx_gelu).astype(o_ref.dtype)


@functools.partial(jax.jit,
                   static_argnames=("row_block", "approx_gelu", "single_buffer_consts"))
def _mlp_dwbn_nhwc(x_nhwc, params, row_block=None, approx_gelu=False,
                   single_buffer_consts=False):
    B, H, W, Cin = x_nhwc.shape
    Chid = params["w1"].shape[1]
    Cout = params["w2"].shape[1]

    # ---- fold eval-mode BatchNorm into the adjacent conv weights/biases (exact) ----
    s1, t1 = _fold_bn(*params["bn1"])
    s2, t2 = _fold_bn(*params["bn2"])
    s3, t3 = _fold_bn(*params["bn3"])
    w1f = params["w1"].astype(jnp.float32) * s1[None, :]
    b1f = params["b1"].astype(jnp.float32) * s1 + t1
    dwkf = params["dwk33"].reshape(9, Chid).astype(jnp.float32) * s2[None, :]
    bdwf = params["bdw"].astype(jnp.float32) * s2 + t2
    w2f = params["w2"].astype(jnp.float32) * s3[None, :]
    b2f = params["b2"].astype(jnp.float32) * s3 + t3

    # ---- pad channels to lane width, W to a sublane multiple; pick the row tile ----
    Cin_p, Chid_p, Cout_p = (_round_up(c, LANE) for c in (Cin, Chid, Cout))
    W_p = _round_up(W, SUB)
    TR = _pick_row_block(H, W_p, row_block)
    n_t = H // TR

    mac_dt = jnp.bfloat16 if _has_bf16_vpu() else jnp.float32
    stage_dt = jnp.bfloat16

    xp = jnp.pad(x_nhwc.astype(jnp.float32),
                 ((0, 0), (0, 0), (0, W_p - W), (0, Cin_p - Cin))).astype(jnp.bfloat16)
    w1p = jnp.pad(w1f, ((0, Cin_p - Cin), (0, Chid_p - Chid))).astype(jnp.bfloat16)
    w2p = jnp.pad(w2f, ((0, Chid_p - Chid), (0, Cout_p - Cout))).astype(jnp.bfloat16)
    dwkp = jnp.pad(dwkf, ((0, 0), (0, Chid_p - Chid))).astype(mac_dt)
    row = lambda v, n, dt: jnp.pad(v, (0, n - v.shape[0])).reshape(1, n).astype(dt)
    b1p = row(b1f, Chid_p, jnp.float32)
    bdwp = row(bdwf, Chid_p, jnp.float32)
    b2p = row(b2f, Cout_p, jnp.float32)

    Wscr = W_p + 2 * PADW              # halo-scratch width

    def const(shape):
        nd = len(shape)
        idx = lambda b, t: (0,) * nd
        if single_buffer_consts:
            try:   # block never changes across the grid -> one VMEM copy is enough
                return pl.BlockSpec(shape, idx, pipeline_mode=pl.Buffered(1))
            except Exception:
                pass
        return pl.BlockSpec(shape, idx)

    out = pl.pallas_call(
        functools.partial(_mlp_dwbn_kernel, W_valid=W, approx_gelu=approx_gelu),
        out_shape=jax.ShapeDtypeStruct((B, H * W_p, Cout_p), x_nhwc.dtype),
        grid_spec=pltpu.PrefetchScalarGridSpec(
            num_scalar_prefetch=0,
            grid=(B, n_t),
            in_specs=[
                # tile body rows
                pl.BlockSpec((1, TR, W_p, Cin_p), lambda b, t: (b, t, 0, 0)),
                # 1-row halo above / below the tile (clamped; discarded at boundaries)
                pl.BlockSpec((1, 1, W_p, Cin_p),
                             lambda b, t: (b, jnp.maximum(t * TR - 1, 0), 0, 0)),
                pl.BlockSpec((1, 1, W_p, Cin_p),
                             lambda b, t: (b, jnp.minimum((t + 1) * TR, H - 1), 0, 0)),
                const((Cin_p, Chid_p)),      # w1 (bf16, BN1 folded)
                const((1, Chid_p)),          # b1 (f32, BN1 folded)
                const((9, Chid_p)),          # dw 3x3 taps (mac dtype, BN2 folded)
                const((1, Chid_p)),          # dw bias (f32, BN2 folded)
                const((Chid_p, Cout_p)),     # w2 (bf16, BN3 folded)
                const((1, Cout_p)),          # b2 (f32, BN3 folded)
            ],
            out_specs=pl.BlockSpec((1, TR * W_p, Cout_p), lambda b, t: (b, t, 0)),
            scratch_shapes=[pltpu.VMEM((TR + 2, Wscr, Chid_p), stage_dt)],
        ),
        compiler_params=pltpu.CompilerParams(
            dimension_semantics=("parallel", "parallel"),
            vmem_limit_bytes=_tpu_vmem_limit_bytes(),
        ),
    )(xp, xp, xp, w1p, b1p, dwkp, bdwp, w2p, b2p)

    return out.reshape(B, H, W_p, Cout_p)[:, :, :W, :Cout]


def mlp_dwbn_forward(x, H, W, params, row_block=None, approx_gelu=False):
    """Mirrors MlpDWBN.forward (eval mode).  x is (B, C, H, W) NCHW or (B, N, C).
    Note: the cls-token path (N == H*W+1) implicitly requires in_features ==
    out_features, exactly like the PyTorch original."""
    sb = _supports_single_buffered_consts()
    if x.ndim == 4:
        x_nhwc = jnp.transpose(x, (0, 2, 3, 1))
        y = _mlp_dwbn_nhwc(x_nhwc, params, row_block=row_block,
                           approx_gelu=approx_gelu, single_buffer_consts=sb)
        return jnp.transpose(y, (0, 3, 1, 2))
    elif x.ndim == 3:
        B, N, C = x.shape
        if N == H * W + 1:
            cls_tokens = x[:, 0, :]
            x_ = x[:, 1:, :]
        else:
            cls_tokens = None
            x_ = x
        x_nhwc = x_.reshape(B, H, W, C)
        y = _mlp_dwbn_nhwc(x_nhwc, params, row_block=row_block,
                           approx_gelu=approx_gelu, single_buffer_consts=sb)
        y = y.reshape(B, H * W, -1)
        if cls_tokens is not None:
            y = jnp.concatenate([cls_tokens[:, None, :], y], axis=1)
        return y
    else:
        raise RuntimeError(f"Unsupported input shape: {x.shape}")


# ------------------------- parameter construction -------------------------

def make_params(key, in_features, hidden_features, out_features):
    ks = jax.random.split(key, 12)
    def n(k, shape, scale=0.1):
        return scale * jax.random.normal(k, shape, dtype=jnp.float32)
    def bn(k, c):
        k1, k2, k3, k4 = jax.random.split(k, 4)
        gamma = 1.0 + 0.1 * jax.random.normal(k1, (c,), jnp.float32)
        beta = 0.1 * jax.random.normal(k2, (c,), jnp.float32)
        mean = 0.1 * jax.random.normal(k3, (c,), jnp.float32)
        var = jax.random.uniform(k4, (c,), jnp.float32, 0.5, 1.5)
        return (gamma, beta, mean, var)
    return {
        "w1": n(ks[0], (in_features, hidden_features)),      # 1x1 conv as (Cin, Chid)
        "b1": n(ks[1], (hidden_features,)),
        "bn1": bn(ks[2], hidden_features),
        "dwk33": n(ks[3], (3, 3, hidden_features)),           # depthwise kernel
        "bdw": n(ks[4], (hidden_features,)),
        "bn2": bn(ks[5], hidden_features),
        "w2": n(ks[6], (hidden_features, out_features)),
        "b2": n(ks[7], (out_features,)),
        "bn3": bn(ks[8], out_features),
    }


# ----------------------------- pure-JAX reference -----------------------------

def ref_forward_nchw(x_nchw, params):
    eps = 1e-5
    def bn(h, p):
        gamma, beta, mean, var = p
        return (h - mean) / jnp.sqrt(var + eps) * gamma + beta
    x = jnp.transpose(x_nchw, (0, 2, 3, 1)).astype(jnp.float32)
    h = jnp.einsum("bhwc,cd->bhwd", x, params["w1"]) + params["b1"]
    h = _gelu(bn(h, params["bn1"]))
    Chid = params["w1"].shape[1]
    h = lax.conv_general_dilated(
        h, params["dwk33"][:, :, None, :], window_strides=(1, 1), padding="SAME",
        dimension_numbers=("NHWC", "HWIO", "NHWC"), feature_group_count=Chid,
    ) + params["bdw"]
    h = _gelu(bn(h, params["bn2"]))
    y = jnp.einsum("bhwc,cd->bhwd", h, params["w2"]) + params["b2"]
    y = _gelu(bn(y, params["bn3"]))
    return jnp.transpose(y, (0, 3, 1, 2))


if __name__ == "__main__":
    key = jax.random.PRNGKey(0)
    k_x, k_x3, k_p = jax.random.split(key, 3)

    B, Cin, H, W = 2, 4, 16, 16
    hidden, Cout = 8, 4

    x = jax.random.normal(k_x, (B, Cin, H, W), dtype=jnp.float32)
    params = make_params(k_p, Cin, hidden, Cout)

    # ---- 4-D (NCHW) path; row_block=8 -> 2 row tiles per image, exercising the
    #      cross-tile fc1 halo recompute as well as the boundary zero rows ----
    y = jax.block_until_ready(mlp_dwbn_forward(x, H, W, params, row_block=8))
    y_ref = ref_forward_nchw(x, params)
    assert y.shape == (B, Cout, H, W)
    err4 = float(jnp.max(jnp.abs(y - y_ref)))
    assert jnp.allclose(y, y_ref, rtol=2e-2, atol=2e-2), err4  # bf16 pipeline tolerance

    # ---- 3-D (B, N, C) path with cls token; default (auto) row tiling ----
    x3 = jax.random.normal(k_x3, (B, H * W + 1, Cin), dtype=jnp.float32)
    y3 = jax.block_until_ready(mlp_dwbn_forward(x3, H, W, params))
    body_nchw = jnp.transpose(x3[:, 1:, :].reshape(B, H, W, Cin), (0, 3, 1, 2))
    yb_ref = jnp.transpose(ref_forward_nchw(body_nchw, params),
                           (0, 2, 3, 1)).reshape(B, H * W, Cout)
    y3_ref = jnp.concatenate([x3[:, :1, :], yb_ref], axis=1)
    assert y3.shape == (B, H * W + 1, Cout)
    err3 = float(jnp.max(jnp.abs(y3 - y3_ref)))
    assert jnp.allclose(y3, y3_ref, rtol=2e-2, atol=2e-2), err3

    print("KERNEL_OK")
</pallas_src>

<mosaic_0001>
module attributes {stable_mosaic.version = 11 : i64} {
  func.func @probe(%arg0: i32, %arg1: memref<8x128xf32, #tpu.memory_space<vmem>>, %arg2: memref<8x128xf32, #tpu.memory_space<vmem>>, %arg3: memref<8x128xf32, #tpu.memory_space<vmem>>) attributes {dimension_semantics = [#tpu.dimension_semantics<arbitrary>], iteration_bounds = array<i64: 2>, scalar_prefetch = 0 : i64, scratch_operands = 0 : i64, tpu.core_type = #tpu.core_type<tc>, window_params = [{pipeline_mode = #tpu.pipeline_mode<synchronous>, transform_indices = @transform_0, window_bounds = array<i64: 8, 128>}, {transform_indices = @transform_1, window_bounds = array<i64: 8, 128>}, {transform_indices = @transform_2, window_bounds = array<i64: 8, 128>}]} {
    %c0 = arith.constant 0 : index
    %c0_0 = arith.constant 0 : index
    %0 = vector.load %arg2[%c0, %c0_0] : memref<8x128xf32, #tpu.memory_space<vmem>>, vector<8x128xf32>
    %c0_1 = arith.constant 0 : index
    %c0_2 = arith.constant 0 : index
    %1 = vector.load %arg1[%c0_1, %c0_2] : memref<8x128xf32, #tpu.memory_space<vmem>>, vector<8x128xf32>
    %2 = arith.addf %0, %1 : vector<8x128xf32>
    %c0_3 = arith.constant 0 : index
    %c0_4 = arith.constant 0 : index
    %3 = vector.load %arg3[%c0_3, %c0_4] : memref<8x128xf32, #tpu.memory_space<vmem>>, vector<8x128xf32>
    tpu.vector_store %arg3[%c0_3, %c0_4], %2 {strides = array<i32>} : memref<8x128xf32, #tpu.memory_space<vmem>>, vector<8x128xf32>,
    return
  }
  func.func @transform_0(%arg0: i32) -> (i32, i32) {
    %c0_i32 = arith.constant 0 : i32
    %c0_i32_0 = arith.constant 0 : i32
    %c0_i32_1 = arith.constant 0 : i32
    return %c0_i32, %c0_i32_0 : i32, i32
  }
  func.func @transform_1(%arg0: i32) -> (i32, i32) {
    %c0_i32 = arith.constant 0 : i32
    %c0_i32_0 = arith.constant 0 : i32
    return %arg0, %c0_i32 : i32, i32
  }
  func.func @transform_2(%arg0: i32) -> (i32, i32) {
    %c0_i32 = arith.constant 0 : i32
    %c0_i32_0 = arith.constant 0 : i32
    return %arg0, %c0_i32 : i32, i32
  }
}

module attributes {stable_mosaic.version = 11 : i64} {
  func.func @_mlp_dwbn_kernel(%arg0: i32, %arg1: i32, %arg2: memref<1x8x16x128xbf16, #tpu.memory_space<vmem>>, %arg3: memref<1x1x16x128xbf16, #tpu.memory_space<vmem>>, %arg4: memref<1x1x16x128xbf16, #tpu.memory_space<vmem>>, %arg5: memref<128x128xbf16, #tpu.memory_space<vmem>>, %arg6: memref<1x128xf32, #tpu.memory_space<vmem>>, %arg7: memref<9x128xbf16, #tpu.memory_space<vmem>>, %arg8: memref<1x128xf32, #tpu.memory_space<vmem>>, %arg9: memref<128x128xbf16, #tpu.memory_space<vmem>>, %arg10: memref<1x128xf32, #tpu.memory_space<vmem>>, %arg11: memref<1x128x128xf32, #tpu.memory_space<vmem>>, %arg12: memref<10x48x128xbf16, #tpu.memory_space<vmem>>) attributes {dimension_semantics = [#tpu.dimension_semantics<parallel>, #tpu.dimension_semantics<parallel>], iteration_bounds = array<i64: 2, 2>, scalar_prefetch = 0 : i64, scratch_operands = 1 : i64, tpu.core_type = #tpu.core_type<tc>, window_params = [{transform_indices = @transform_0, window_bounds = array<i64: 1, 8, 16, 128>}, {transform_indices = @transform_1, window_bounds = array<i64: 1, 1, 16, 128>}, {transform_indices = @transform_2, window_bounds = array<i64: 1, 1, 16, 128>}, {pipeline_mode = #tpu.pipeline_mode<synchronous>, transform_indices = @transform_3, window_bounds = array<i64: 128, 128>}, {pipeline_mode = #tpu.pipeline_mode<synchronous>, transform_indices = @transform_4, window_bounds = array<i64: 1, 128>}, {pipeline_mode = #tpu.pipeline_mode<synchronous>, transform_indices = @transform_5, window_bounds = array<i64: 9, 128>}, {pipeline_mode = #tpu.pipeline_mode<synchronous>, transform_indices = @transform_6, window_bounds = array<i64: 1, 128>}, {pipeline_mode = #tpu.pipeline_mode<synchronous>, transform_indices = @transform_7, window_bounds = array<i64: 128, 128>}, {pipeline_mode = #tpu.pipeline_mode<synchronous>, transform_indices = @transform_8, window_bounds = array<i64: 1, 128>}, {transform_indices = @transform_9, window_bounds = array<i64: 1, 128, 128>}]} {
    %c0 = arith.constant 0 : index
    %c0_0 = arith.constant 0 : index
    %0 = vector.load %arg6[%c0, %c0_0] : memref<1x128xf32, #tpu.memory_space<vmem>>, vector<1x128xf32>
    %1 = vector.shape_cast %0 : vector<1x128xf32> to vector<128xf32>
    %c0_1 = arith.constant 0 : index
    %c0_2 = arith.constant 0 : index
    %c0_3 = arith.constant 0 : index
    %c0_4 = arith.constant 0 : index
    %2 = vector.load %arg2[%c0_1, %c0_2, %c0_3, %c0_4] : memref<1x8x16x128xbf16, #tpu.memory_space<vmem>>, vector<1x8x16x128xbf16>
    %3 = vector.shape_cast %2 : vector<1x8x16x128xbf16> to vector<8x16x128xbf16>
    %4 = vector.shape_cast %3 : vector<8x16x128xbf16> to vector<128x128xbf16>
    %c0_5 = arith.constant 0 : index
    %c0_6 = arith.constant 0 : index
    %5 = vector.load %arg5[%c0_5, %c0_6] : memref<128x128xbf16, #tpu.memory_space<vmem>>, vector<128x128xbf16>
    %cst = arith.constant dense<0.000000e+00> : vector<128x128xf32>
    %6 = tpu.matmul %4, %5, %cst {dimension_numbers = #tpu.dot_dimension_numbers<[1], [0], [0], [1], [0, 0, 1, 1], [], []>} : vector<128x128xbf16>, vector<128x128xbf16>, vector<128x128xf32> -> vector<128x128xf32>
    %7 = vector.shape_cast %1 : vector<128xf32> to vector<1x128xf32>
    %8 = vector.broadcast %7 : vector<1x128xf32> to vector<128x128xf32>
    %9 = arith.addf %6, %8 : vector<128x128xf32>
    %cst_7 = arith.constant 5.000000e-01 : f32
    %10 = vector.broadcast %cst_7 : f32 to vector<128x128xf32>
    %11 = arith.mulf %10, %9 : vector<128x128xf32>
    %cst_8 = arith.constant 0.707106769 : f32
    %12 = vector.broadcast %cst_8 : f32 to vector<128x128xf32>
    %13 = arith.mulf %9, %12 : vector<128x128xf32>
    %14 = math.erf %13 : vector<128x128xf32>
    %cst_9 = arith.constant 1.000000e+00 : f32
    %15 = vector.broadcast %cst_9 : f32 to vector<128x128xf32>
    %16 = arith.addf %15, %14 : vector<128x128xf32>
    %17 = arith.mulf %11, %16 : vector<128x128xf32>
    %18 = arith.truncf %17 : vector<128x128xf32> to vector<128x128xbf16>
    %19 = vector.shape_cast %18 : vector<128x128xbf16> to vector<8x16x128xbf16>
    %c0_10 = arith.constant 0 : index
    %c0_11 = arith.constant 0 : index
    %c0_12 = arith.constant 0 : index
    %c0_13 = arith.constant 0 : index
    %20 = vector.load %arg3[%c0_10, %c0_11, %c0_12, %c0_13] : memref<1x1x16x128xbf16, #tpu.memory_space<vmem>>, vector<1x1x16x128xbf16>
    %21 = vector.shape_cast %20 : vector<1x1x16x128xbf16> to vector<16x128xbf16>
    %c0_14 = arith.constant 0 : index
    %c0_15 = arith.constant 0 : index
    %22 = vector.load %arg5[%c0_14, %c0_15] : memref<128x128xbf16, #tpu.memory_space<vmem>>, vector<128x128xbf16>
    %cst_16 = arith.constant dense<0.000000e+00> : vector<16x128xf32>
    %23 = tpu.matmul %21, %22, %cst_16 {dimension_numbers = #tpu.dot_dimension_numbers<[1], [0], [0], [1], [0, 0, 1, 1], [], []>} : vector<16x128xbf16>, vector<128x128xbf16>, vector<16x128xf32> -> vector<16x128xf32>
    %24 = vector.shape_cast %1 : vector<128xf32> to vector<1x128xf32>
    %25 = vector.broadcast %24 : vector<1x128xf32> to vector<16x128xf32>
    %26 = arith.addf %23, %25 : vector<16x128xf32>
    %cst_17 = arith.constant 5.000000e-01 : f32
    %27 = vector.broadcast %cst_17 : f32 to vector<16x128xf32>
    %28 = arith.mulf %27, %26 : vector<16x128xf32>
    %cst_18 = arith.constant 0.707106769 : f32
    %29 = vector.broadcast %cst_18 : f32 to vector<16x128xf32>
    %30 = arith.mulf %26, %29 : vector<16x128xf32>
    %31 = math.erf %30 : vector<16x128xf32>
    %cst_19 = arith.constant 1.000000e+00 : f32
    %32 = vector.broadcast %cst_19 : f32 to vector<16x128xf32>
    %33 = arith.addf %32, %31 : vector<16x128xf32>
    %34 = arith.mulf %28, %33 : vector<16x128xf32>
    %35 = arith.truncf %34 : vector<16x128xf32> to vector<16x128xbf16>
    %c0_20 = arith.constant 0 : index
    %c0_21 = arith.constant 0 : index
    %c0_22 = arith.constant 0 : index
    %c0_23 = arith.constant 0 : index
    %36 = vector.load %arg4[%c0_20, %c0_21, %c0_22, %c0_23] : memref<1x1x16x128xbf16, #tpu.memory_space<vmem>>, vector<1x1x16x128xbf16>
    %37 = vector.shape_cast %36 : vector<1x1x16x128xbf16> to vector<16x128xbf16>
    %c0_24 = arith.constant 0 : index
    %c0_25 = arith.constant 0 : index
    %38 = vector.load %arg5[%c0_24, %c0_25] : memref<128x128xbf16, #tpu.memory_space<vmem>>, vector<128x128xbf16>
    %cst_26 = arith.constant dense<0.000000e+00> : vector<16x128xf32>
    %39 = tpu.matmul %37, %38, %cst_26 {dimension_numbers = #tpu.dot_dimension_numbers<[1], [0], [0], [1], [0, 0, 1, 1], [], []>} : vector<16x128xbf16>, vector<128x128xbf16>, vector<16x128xf32> -> vector<16x128xf32>
    %40 = vector.shape_cast %1 : vector<128xf32> to vector<1x128xf32>
    %41 = vector.broadcast %40 : vector<1x128xf32> to vector<16x128xf32>
    %42 = arith.addf %39, %41 : vector<16x128xf32>
    %cst_27 = arith.constant 5.000000e-01 : f32
    %43 = vector.broadcast %cst_27 : f32 to vector<16x128xf32>
    %44 = arith.mulf %43, %42 : vector<16x128xf32>
    %cst_28 = arith.constant 0.707106769 : f32
    %45 = vector.broadcast %cst_28 : f32 to vector<16x128xf32>
    %46 = arith.mulf %42, %45 : vector<16x128xf32>
    %47 = math.erf %46 : vector<16x128xf32>
    %cst_29 = arith.constant 1.000000e+00 : f32
    %48 = vector.broadcast %cst_29 : f32 to vector<16x128xf32>
    %49 = arith.addf %48, %47 : vector<16x128xf32>
    %50 = arith.mulf %44, %49 : vector<16x128xf32>
    %51 = arith.truncf %50 : vector<16x128xf32> to vector<16x128xbf16>
    %c0_i32 = arith.constant 0 : i32
    %52 = arith.cmpi eq, %arg1, %c0_i32 : i32
    %cst_30 = arith.constant 0.000000e+00 : bf16
    %53 = vector.broadcast %cst_30 : bf16 to vector<16x128xbf16>
    %54 = arith.select %52, %53, %35 : vector<16x128xbf16>
    %c1_i32 = arith.constant 1 : i32
    %55 = arith.cmpi eq, %arg1, %c1_i32 : i32
    %cst_31 = arith.constant 0.000000e+00 : bf16
    %56 = vector.broadcast %cst_31 : bf16 to vector<16x128xbf16>
    %57 = arith.select %55, %56, %51 : vector<16x128xbf16>
    %c0_32 = arith.constant 0 : index
    %c16 = arith.constant 16 : index
    %c0_33 = arith.constant 0 : index
    %58 = vector.load %arg12[%c0_32, %c16, %c0_33] : memref<10x48x128xbf16, #tpu.memory_space<vmem>>, vector<1x16x128xbf16>
    %59 = vector.shape_cast %58 : vector<1x16x128xbf16> to vector<16x128xbf16>
    %60 = vector.shape_cast %54 : vector<16x128xbf16> to vector<1x16x128xbf16>
    tpu.vector_store %arg12[%c0_32, %c16, %c0_33], %60 {strides = array<i32>} : memref<10x48x128xbf16, #tpu.memory_space<vmem>>, vector<1x16x128xbf16>,
    %c1 = arith.constant 1 : index
    %c16_34 = arith.constant 16 : index
    %c0_35 = arith.constant 0 : index
    %61 = vector.load %arg12[%c1, %c16_34, %c0_35] : memref<10x48x128xbf16, #tpu.memory_space<vmem>>, vector<8x16x128xbf16>
    tpu.vector_store %arg12[%c1, %c16_34, %c0_35], %19 {strides = array<i32>} : memref<10x48x128xbf16, #tpu.memory_space<vmem>>, vector<8x16x128xbf16>,
    %c9 = arith.constant 9 : index
    %c16_36 = arith.constant 16 : index
    %c0_37 = arith.constant 0 : index
    %62 = vector.load %arg12[%c9, %c16_36, %c0_37] : memref<10x48x128xbf16, #tpu.memory_space<vmem>>, vector<1x16x128xbf16>
    %63 = vector.shape_cast %62 : vector<1x16x128xbf16> to vector<16x128xbf16>
    %64 = vector.shape_cast %57 : vector<16x128xbf16> to vector<1x16x128xbf16>
    tpu.vector_store %arg12[%c9, %c16_36, %c0_37], %64 {strides = array<i32>} : memref<10x48x128xbf16, #tpu.memory_space<vmem>>, vector<1x16x128xbf16>,
    %cst_38 = arith.constant 0.000000e+00 : bf16
    %65 = vector.broadcast %cst_38 : bf16 to vector<10x1x128xbf16>
    %c0_39 = arith.constant 0 : index
    %c15 = arith.constant 15 : index
    %c0_40 = arith.constant 0 : index
    %66 = vector.load %arg12[%c0_39, %c15, %c0_40] : memref<10x48x128xbf16, #tpu.memory_space<vmem>>, vector<10x1x128xbf16>
    tpu.vector_store %arg12[%c0_39, %c15, %c0_40], %65 {strides = array<i32>} : memref<10x48x128xbf16, #tpu.memory_space<vmem>>, vector<10x1x128xbf16>,
    %cst_41 = arith.constant 0.000000e+00 : bf16
    %67 = vector.broadcast %cst_41 : bf16 to vector<10x1x128xbf16>
    %c0_42 = arith.constant 0 : index
    %c32 = arith.constant 32 : index
    %c0_43 = arith.constant 0 : index
    %68 = vector.load %arg12[%c0_42, %c32, %c0_43] : memref<10x48x128xbf16, #tpu.memory_space<vmem>>, vector<10x1x128xbf16>
    tpu.vector_store %arg12[%c0_42, %c32, %c0_43], %67 {strides = array<i32>} : memref<10x48x128xbf16, #tpu.memory_space<vmem>>, vector<10x1x128xbf16>,
    %c0_44 = arith.constant 0 : index
    %c0_45 = arith.constant 0 : index
    %69 = vector.load %arg7[%c0_44, %c0_45] : memref<9x128xbf16, #tpu.memory_space<vmem>>, vector<9x128xbf16>
    %c0_46 = arith.constant 0 : index
    %c15_47 = arith.constant 15 : index
    %c0_48 = arith.constant 0 : index
    %70 = vector.load %arg12[%c0_46, %c15_47, %c0_48] : memref<10x48x128xbf16, #tpu.memory_space<vmem>>, vector<10x16x128xbf16>
    %71 = vector.extract_strided_slice %70 {offsets = [0, 0, 0], sizes = [8, 16, 128], strides = [1, 1, 1]} : vector<10x16x128xbf16> to vector<8x16x128xbf16>
    %72 = vector.extract_strided_slice %69 {offsets = [0, 0], sizes = [1, 128], strides = [1, 1]} : vector<9x128xbf16> to vector<1x128xbf16>
    %73 = vector.shape_cast %72 : vector<1x128xbf16> to vector<128xbf16>
    %74 = vector.shape_cast %73 : vector<128xbf16> to vector<1x1x128xbf16>
    %75 = vector.broadcast %74 : vector<1x1x128xbf16> to vector<8x16x128xbf16>
    %76 = arith.mulf %71, %75 : vector<8x16x128xbf16>
    %77 = vector.extract_strided_slice %70 {offsets = [1, 0, 0], sizes = [8, 16, 128], strides = [1, 1, 1]} : vector<10x16x128xbf16> to vector<8x16x128xbf16>
    %78 = vector.extract_strided_slice %69 {offsets = [3, 0], sizes = [1, 128], strides = [1, 1]} : vector<9x128xbf16> to vector<1x128xbf16>
    %79 = vector.shape_cast %78 : vector<1x128xbf16> to vector<128xbf16>
    %80 = vector.shape_cast %79 : vector<128xbf16> to vector<1x1x128xbf16>
    %81 = vector.broadcast %80 : vector<1x1x128xbf16> to vector<8x16x128xbf16>
    %82 = arith.mulf %77, %81 : vector<8x16x128xbf16>
    %83 = arith.addf %76, %82 : vector<8x16x128xbf16>
    %84 = vector.extract_strided_slice %70 {offsets = [2, 0, 0], sizes = [8, 16, 128], strides = [1, 1, 1]} : vector<10x16x128xbf16> to vector<8x16x128xbf16>
    %85 = vector.extract_strided_slice %69 {offsets = [6, 0], sizes = [1, 128], strides = [1, 1]} : vector<9x128xbf16> to vector<1x128xbf16>
    %86 = vector.shape_cast %85 : vector<1x128xbf16> to vector<128xbf16>
    %87 = vector.shape_cast %86 : vector<128xbf16> to vector<1x1x128xbf16>
    %88 = vector.broadcast %87 : vector<1x1x128xbf16> to vector<8x16x128xbf16>
    %89 = arith.mulf %84, %88 : vector<8x16x128xbf16>
    %90 = arith.addf %83, %89 : vector<8x16x128xbf16>
    %c0_49 = arith.constant 0 : index
    %c16_50 = arith.constant 16 : index
    %c0_51 = arith.constant 0 : index
    %91 = vector.load %arg12[%c0_49, %c16_50, %c0_51] : memref<10x48x128xbf16, #tpu.memory_space<vmem>>, vector<10x16x128xbf16>
    %92 = vector.extract_strided_slice %91 {offsets = [0, 0, 0], sizes = [8, 16, 128], strides = [1, 1, 1]} : vector<10x16x128xbf16> to vector<8x16x128xbf16>
    %93 = vector.extract_strided_slice %69 {offsets = [1, 0], sizes = [1, 128], strides = [1, 1]} : vector<9x128xbf16> to vector<1x128xbf16>
    %94 = vector.shape_cast %93 : vector<1x128xbf16> to vector<128xbf16>
    %95 = vector.shape_cast %94 : vector<128xbf16> to vector<1x1x128xbf16>
    %96 = vector.broadcast %95 : vector<1x1x128xbf16> to vector<8x16x128xbf16>
    %97 = arith.mulf %92, %96 : vector<8x16x128xbf16>
    %98 = vector.extract_strided_slice %91 {offsets = [1, 0, 0], sizes = [8, 16, 128], strides = [1, 1, 1]} : vector<10x16x128xbf16> to vector<8x16x128xbf16>
    %99 = vector.extract_strided_slice %69 {offsets = [4, 0], sizes = [1, 128], strides = [1, 1]} : vector<9x128xbf16> to vector<1x128xbf16>
    %100 = vector.shape_cast %99 : vector<1x128xbf16> to vector<128xbf16>
    %101 = vector.shape_cast %100 : vector<128xbf16> to vector<1x1x128xbf16>
    %102 = vector.broadcast %101 : vector<1x1x128xbf16> to vector<8x16x128xbf16>
    %103 = arith.mulf %98, %102 : vector<8x16x128xbf16>
    %104 = arith.addf %97, %103 : vector<8x16x128xbf16>
    %105 = vector.extract_strided_slice %91 {offsets = [2, 0, 0], sizes = [8, 16, 128], strides = [1, 1, 1]} : vector<10x16x128xbf16> to vector<8x16x128xbf16>
    %106 = vector.extract_strided_slice %69 {offsets = [7, 0], sizes = [1, 128], strides = [1, 1]} : vector<9x128xbf16> to vector<1x128xbf16>
    %107 = vector.shape_cast %106 : vector<1x128xbf16> to vector<128xbf16>
    %108 = vector.shape_cast %107 : vector<128xbf16> to vector<1x1x128xbf16>
    %109 = vector.broadcast %108 : vector<1x1x128xbf16> to vector<8x16x128xbf16>
    %110 = arith.mulf %105, %109 : vector<8x16x128xbf16>
    %111 = arith.addf %104, %110 : vector<8x16x128xbf16>
    %c0_52 = arith.constant 0 : index
    %c17 = arith.constant 17 : index
    %c0_53 = arith.constant 0 : index
    %112 = vector.load %arg12[%c0_52, %c17, %c0_53] : memref<10x48x128xbf16, #tpu.memory_space<vmem>>, vector<10x16x128xbf16>
    %113 = vector.extract_strided_slice %112 {offsets = [0, 0, 0], sizes = [8, 16, 128], strides = [1, 1, 1]} : vector<10x16x128xbf16> to vector<8x16x128xbf16>
    %114 = vector.extract_strided_slice %69 {offsets = [2, 0], sizes = [1, 128], strides = [1, 1]} : vector<9x128xbf16> to vector<1x128xbf16>
    %115 = vector.shape_cast %114 : vector<1x128xbf16> to vector<128xbf16>
    %116 = vector.shape_cast %115 : vector<128xbf16> to vector<1x1x128xbf16>
    %117 = vector.broadcast %116 : vector<1x1x128xbf16> to vector<8x16x128xbf16>
    %118 = arith.mulf %113, %117 : vector<8x16x128xbf16>
    %119 = vector.extract_strided_slice %112 {offsets = [1, 0, 0], sizes = [8, 16, 128], strides = [1, 1, 1]} : vector<10x16x128xbf16> to vector<8x16x128xbf16>
    %120 = vector.extract_strided_slice %69 {offsets = [5, 0], sizes = [1, 128], strides = [1, 1]} : vector<9x128xbf16> to vector<1x128xbf16>
    %121 = vector.shape_cast %120 : vector<1x128xbf16> to vector<128xbf16>
    %122 = vector.shape_cast %121 : vector<128xbf16> to vector<1x1x128xbf16>
    %123 = vector.broadcast %122 : vector<1x1x128xbf16> to vector<8x16x128xbf16>
    %124 = arith.mulf %119, %123 : vector<8x16x128xbf16>
    %125 = arith.addf %118, %124 : vector<8x16x128xbf16>
    %126 = vector.extract_strided_slice %112 {offsets = [2, 0, 0], sizes = [8, 16, 128], strides = [1, 1, 1]} : vector<10x16x128xbf16> to vector<8x16x128xbf16>
    %127 = vector.extract_strided_slice %69 {offsets = [8, 0], sizes = [1, 128], strides = [1, 1]} : vector<9x128xbf16> to vector<1x128xbf16>
    %128 = vector.shape_cast %127 : vector<1x128xbf16> to vector<128xbf16>
    %129 = vector.shape_cast %128 : vector<128xbf16> to vector<1x1x128xbf16>
    %130 = vector.broadcast %129 : vector<1x1x128xbf16> to vector<8x16x128xbf16>
    %131 = arith.mulf %126, %130 : vector<8x16x128xbf16>
    %132 = arith.addf %125, %131 : vector<8x16x128xbf16>
    %133 = arith.extf %90 : vector<8x16x128xbf16> to vector<8x16x128xf32>
    %134 = arith.extf %111 : vector<8x16x128xbf16> to vector<8x16x128xf32>
    %135 = arith.addf %133, %134 : vector<8x16x128xf32>
    %136 = arith.extf %132 : vector<8x16x128xbf16> to vector<8x16x128xf32>
    %137 = arith.addf %135, %136 : vector<8x16x128xf32>
    %c0_54 = arith.constant 0 : index
    %c0_55 = arith.constant 0 : index
    %138 = vector.load %arg8[%c0_54, %c0_55] : memref<1x128xf32, #tpu.memory_space<vmem>>, vector<1x128xf32>
    %139 = vector.shape_cast %138 : vector<1x128xf32> to vector<128xf32>
    %140 = vector.shape_cast %139 : vector<128xf32> to vector<1x1x128xf32>
    %141 = vector.broadcast %140 : vector<1x1x128xf32> to vector<8x16x128xf32>
    %142 = arith.addf %137, %141 : vector<8x16x128xf32>
    %cst_56 = arith.constant 5.000000e-01 : f32
    %143 = vector.broadcast %cst_56 : f32 to vector<8x16x128xf32>
    %144 = arith.mulf %143, %142 : vector<8x16x128xf32>
    %cst_57 = arith.constant 0.707106769 : f32
    %145 = vector.broadcast %cst_57 : f32 to vector<8x16x128xf32>
    %146 = arith.mulf %142, %145 : vector<8x16x128xf32>
    %147 = math.erf %146 : vector<8x16x128xf32>
    %cst_58 = arith.constant 1.000000e+00 : f32
    %148 = vector.broadcast %cst_58 : f32 to vector<8x16x128xf32>
    %149 = arith.addf %148, %147 : vector<8x16x128xf32>
    %150 = arith.mulf %144, %149 : vector<8x16x128xf32>
    %151 = arith.truncf %150 : vector<8x16x128xf32> to vector<8x16x128xbf16>
    %152 = vector.shape_cast %151 : vector<8x16x128xbf16> to vector<128x128xbf16>
    %c0_59 = arith.constant 0 : index
    %c0_60 = arith.constant 0 : index
    %153 = vector.load %arg9[%c0_59, %c0_60] : memref<128x128xbf16, #tpu.memory_space<vmem>>, vector<128x128xbf16>
    %cst_61 = arith.constant dense<0.000000e+00> : vector<128x128xf32>
    %154 = tpu.matmul %152, %153, %cst_61 {dimension_numbers = #tpu.dot_dimension_numbers<[1], [0], [0], [1], [0, 0, 1, 1], [], []>} : vector<128x128xbf16>, vector<128x128xbf16>, vector<128x128xf32> -> vector<128x128xf32>
    %c0_62 = arith.constant 0 : index
    %c0_63 = arith.constant 0 : index
    %155 = vector.load %arg10[%c0_62, %c0_63] : memref<1x128xf32, #tpu.memory_space<vmem>>, vector<1x128xf32>
    %156 = vector.shape_cast %155 : vector<1x128xf32> to vector<128xf32>
    %157 = vector.shape_cast %156 : vector<128xf32> to vector<1x128xf32>
    %158 = vector.broadcast %157 : vector<1x128xf32> to vector<128x128xf32>
    %159 = arith.addf %154, %158 : vector<128x128xf32>
    %cst_64 = arith.constant 5.000000e-01 : f32
    %160 = vector.broadcast %cst_64 : f32 to vector<128x128xf32>
    %161 = arith.mulf %160, %159 : vector<128x128xf32>
    %cst_65 = arith.constant 0.707106769 : f32
    %162 = vector.broadcast %cst_65 : f32 to vector<128x128xf32>
    %163 = arith.mulf %159, %162 : vector<128x128xf32>
    %164 = math.erf %163 : vector<128x128xf32>
    %cst_66 = arith.constant 1.000000e+00 : f32
    %165 = vector.broadcast %cst_66 : f32 to vector<128x128xf32>
    %166 = arith.addf %165, %164 : vector<128x128xf32>
    %167 = arith.mulf %161, %166 : vector<128x128xf32>
    %c0_67 = arith.constant 0 : index
    %c0_68 = arith.constant 0 : index
    %c0_69 = arith.constant 0 : index
    %168 = vector.load %arg11[%c0_67, %c0_68, %c0_69] : memref<1x128x128xf32, #tpu.memory_space<vmem>>, vector<1x128x128xf32>
    %169 = vector.shape_cast %168 : vector<1x128x128xf32> to vector<128x128xf32>
    %170 = vector.shape_cast %167 : vector<128x128xf32> to vector<1x128x128xf32>
    tpu.vector_store %arg11[%c0_67, %c0_68, %c0_69], %170 {strides = array<i32>} : memref<1x128x128xf32, #tpu.memory_space<vmem>>, vector<1x128x128xf32>,
    return
  }
  func.func @transform_0(%arg0: i32, %arg1: i32) -> (i32, i32, i32, i32) {
    %c0_i32 = arith.constant 0 : i32
    %c0_i32_0 = arith.constant 0 : i32
    %c0_i32_1 = arith.constant 0 : i32
    return %arg0, %arg1, %c0_i32, %c0_i32_0 : i32, i32, i32, i32
  }
  func.func @transform_1(%arg0: i32, %arg1: i32) -> (i32, i32, i32, i32) {
    %c8_i32 = arith.constant 8 : i32
    %0 = arith.muli %arg1, %c8_i32 : i32
    %c1_i32 = arith.constant 1 : i32
    %1 = arith.subi %0, %c1_i32 : i32
    %c0_i32 = arith.constant 0 : i32
    %2 = arith.maxsi %1, %c0_i32 : i32
    %c0_i32_0 = arith.constant 0 : i32
    %c0_i32_1 = arith.constant 0 : i32
    %c0_i32_2 = arith.constant 0 : i32
    return %arg0, %2, %c0_i32_0, %c0_i32_1 : i32, i32, i32, i32
  }
  func.func @transform_2(%arg0: i32, %arg1: i32) -> (i32, i32, i32, i32) {
    %c1_i32 = arith.constant 1 : i32
    %0 = arith.addi %arg1, %c1_i32 : i32
    %c8_i32 = arith.constant 8 : i32
    %1 = arith.muli %0, %c8_i32 : i32
    %c15_i32 = arith.constant 15 : i32
    %2 = arith.minsi %1, %c15_i32 : i32
    %c0_i32 = arith.constant 0 : i32
    %c0_i32_0 = arith.constant 0 : i32
    %c0_i32_1 = arith.constant 0 : i32
    return %arg0, %2, %c0_i32, %c0_i32_0 : i32, i32, i32, i32
  }
  func.func @transform_3(%arg0: i32, %arg1: i32) -> (i32, i32) {
    %c0_i32 = arith.constant 0 : i32
    %c0_i32_0 = arith.constant 0 : i32
    %c0_i32_1 = arith.constant 0 : i32
    return %c0_i32, %c0_i32_0 : i32, i32
  }
  func.func @transform_4(%arg0: i32, %arg1: i32) -> (i32, i32) {
    %c0_i32 = arith.constant 0 : i32
    %c0_i32_0 = arith.constant 0 : i32
    %c0_i32_1 = arith.constant 0 : i32
    return %c0_i32, %c0_i32_0 : i32, i32
  }
  func.func @transform_5(%arg0: i32, %arg1: i32) -> (i32, i32) {
    %c0_i32 = arith.constant 0 : i32
    %c0_i32_0 = arith.constant 0 : i32
    %c0_i32_1 = arith.constant 0 : i32
    return %c0_i32, %c0_i32_0 : i32, i32
  }
  func.func @transform_6(%arg0: i32, %arg1: i32) -> (i32, i32) {
    %c0_i32 = arith.constant 0 : i32
    %c0_i32_0 = arith.constant 0 : i32
    %c0_i32_1 = arith.constant 0 : i32
    return %c0_i32, %c0_i32_0 : i32, i32
  }
  func.func @transform_7(%arg0: i32, %arg1: i32) -> (i32, i32) {
    %c0_i32 = arith.constant 0 : i32
    %c0_i32_0 = arith.constant 0 : i32
    %c0_i32_1 = arith.constant 0 : i32
    return %c0_i32, %c0_i32_0 : i32, i32
  }
  func.func @transform_8(%arg0: i32, %arg1: i32) -> (i32, i32) {
    %c0_i32 = arith.constant 0 : i32
    %c0_i32_0 = arith.constant 0 : i32
    %c0_i32_1 = arith.constant 0 : i32
    return %c0_i32, %c0_i32_0 : i32, i32
  }
  func.func @transform_9(%arg0: i32, %arg1: i32) -> (i32, i32, i32) {
    %c0_i32 = arith.constant 0 : i32
    %c0_i32_0 = arith.constant 0 : i32
    return %arg0, %arg1, %c0_i32 : i32, i32, i32
  }
}

</mosaic_0001>

<bundles_post_ra>
// kernel: tpu_custom_call.1
= control target key start
LH: loop header
LB: loop body
LE: loop exit
PB: predicated region body
PF: predicated region fallthrough
CT: control target
= control target key end

     0   :  { %7 = vsyncpa [#allocation3], 0  ;;  %s651_s0 = inlined_call_operand.hbm [shape: f32[8,128], index: 0, kind: input, shape index: {}]   ;;  %s652_s1 = inlined_call_operand.hbm [shape: f32[16,128], index: 1, kind: input, shape index: {}]   ;;  %s653_s2 = inlined_call_operand.hbm [shape: f32[16,128], index: 2, kind: output, shape index: {}]  }
   0x1   :  { %8 = vsyncpa [#allocation6], 0 }
   0x2   :  { %10 = vsyncpa [#allocation6 + $0x1], 0 }
   0x3   :  { %11 = vsyncpa [#allocation4], 0 }
   0x4   :  { %13 = vsyncpa [#allocation4 + $0x1], 0  ;;  %s485_s9 = smov 0   ;;  %s487_s10 = smov 0  }
   0x5   :  { %s489_s11 = smov 0   ;;  %s491_s12 = smov 0  }
   0x6 LB: > { %s506_s13 = sadd.s32 4294967295, %s465_s12   ;;  %s272_s14 = sadd.s32 4294967294, %s465_s12   ;;  %s465_s12 = sphi %s491_s12, %s676_s12   ;;  %s461_s11 = sphi %s489_s11, %s675_s11   ;;  %s457_s10 = sphi %s487_s10, %s674_s10   ;;  %s453_s9 = sphi %s485_s9, %s673_s9  }
   0x7   : > { %p60_p0 = scmp.ne.s32.totalorder %s457_s10, %s453_s9  ;;  %p654_p1 = scmp.eq.s32.totalorder %s506_s13, 0 }
   0x8   : > { %p90_p3 = scmp.eq.s32.totalorder %s272_s14, 1  ;;  %p273_p5 = scmp.ge.s32.totalorder %s465_s12, 1 }
   0x9   : > { %p515_p4 = por %p654_p1, %p60_p0  ;;  %p97_p7 = scmp.lt.s32.totalorder %s465_s12, 3 }
   0xa   : > { %p520_p6 = por %p90_p3, %p60_p0  ;;  %s467_s18 = smov [#allocation2]  }
   0xb   : > { %s658_s15 = scalar_select %p515_p4, 1, 0 }
   0xc   : > { %s659_s16 = scalar_select %p520_p6, 1, 0 }
   0xd   : > { %p525_p8 = pnand %p273_p5, %p97_p7  ;;  %s110_s19 = sshll.u32 %s467_s18, 4  ;;  %s111_s19 = int_to_ptr.vmem [resolvable:$true] %s110_s19 }
   0xe   : > { %s533_s20 = sadd.s32 1, %s465_s12   ;;  %s47_s24 = sadd.s32 1, %s461_s11 }
   0xf   : > { %s660_s17 = scalar_select %p525_p8, 1, 0 }
  0x10   : > { %p294_p10 = pneg %p525_p8  ;;  %s44_s22 = ssub.s32 %s465_s12, %s533_s20 }
  0x11   : > { %p543_p12 = scmp.eq.s32.totalorder %s44_s22, 0  ;;  %p54_p13 = scmp.ne.s32.totalorder %s461_s11, %s457_s10 }
  0x12   : > { %p537_p11 = pnand %p294_p10, %p654_p1  ;;  %s354_s25 = scalar_lea.vmem %s111_s19, 128 }
  0x13   : > { %p355_p3 = scmp.ne.s32.totalorder %s111_s19, %s354_s25  ;;  %p362_p9 = scmp.lt.s32.totalorder %s111_s19, %s111_s19 }
  0x14   : > { %p345_p0 = pneg %p537_p11  ;;  %p363_p2 = scmp.lt.s32.totalorder %s354_s25, %s354_s25 }
  0x16   : > { %p357_p5 = pnand %p355_p3, %p345_p0  ;;  %p364_p10 = por %p363_p2, %p362_p9 }
  0x18   : > { %p358_p7 = pneg %p357_p5 }
  0x1a   : > { %p365_p1 = pnand %p364_p10, %p358_p7 }
  0x1c   : > { %368 = shalt.err (!%p365_p1)
}
  0x1d   : > { %297 = dma.hbm_to_vmem [thread:$0]  (!%p537_p11), %s651_s0, 128, %s111_s19, [#allocation3]  }
  0x1e   : > { %s560_s28 = scalar_select %p543_p12, %s461_s11, %s47_s24  }
  0x1f   : > { %p55_p1 = scmp.eq.s32.totalorder %s465_s12, 0  ;;  %p663_p2 = scmp.eq.s32.totalorder %s506_s13, 1 }
  0x20   : > { %p307_p0 = scmp.lt.s32.totalorder %s465_s12, 2  ;;  %s121_s30 = sand.u32 1, %s461_s11  }
  0x21   : > { %p568_p9 = por %p663_p2, %p54_p13  ;;  %p56_p3 = por %p55_p1, %p54_p13 }
  0x22   : > { %s276_s3 = sshll.u32 %s121_s30, 3  ;;  %s277_s4 = sshll.u32 %s465_s12, 7 }
  0x23   : > { %s664_s29 = scalar_select %p568_p9, 1, 0 }
  0x24   : > { %s581_s7 = scalar_lea.hbm %s652_s1, %s277_s4  ;;  %s125_s8 = scalar_lea.vmem [#allocation5], %s276_s3 }
  0x25   : > { %s132_s14 = sshll.u32 %s125_s8, 4  ;;  %p583_p11 = pnand %p307_p0, %p56_p3  ;;  %s133_s14 = int_to_ptr.vmem [resolvable:$true] %s132_s14 }
  0x26   : > { %s122_s19 = scalar_lea.sflag [#allocation6], %s121_s30  ;;  %s369_s21 = scalar_lea.hbm %s581_s7, 128 }
  0x27   : > { %p370_p12 = scmp.ne.s32.totalorder %s581_s7, %s369_s21  ;;  %p371_p13 = pneg %p583_p11 }
  0x28   : > { %s374_s24 = scalar_lea.hbm %s652_s1, 256  ;;  %p375_p10 = scmp.lt.s32.totalorder %s581_s7, %s652_s1 }
  0x29   : > { %p372_p5 = pnand %p371_p13, %p370_p12  ;;  %p376_p1 = scmp.lt.s32.totalorder %s374_s24, %s369_s21 }
  0x2b   : > { %p373_p7 = pneg %p372_p5  ;;  %p377_p2 = por %p376_p1, %p375_p10 }
  0x2d   : > { %p378_p0 = pnand %p377_p2, %p373_p7 }
  0x2f   : > { %381 = shalt.err (!%p378_p0)
}
  0x30   : > { %s382_s27 = scalar_lea.vmem %s133_s14, 128  ;;  %s468_s30 = smov [#allocation5]  }
  0x31   : > { %p383_p3 = scmp.ne.s32.totalorder %s133_s14, %s382_s27  ;;  %s387_s3 = sshll.u32 %s468_s30, 4  ;;  %s388_s3 = int_to_ptr.vmem [resolvable:$false] %s387_s3 }
  0x32   : > { %s389_s4 = scalar_lea.vmem %s388_s3, 256  ;;  %p390_p12 = scmp.lt.s32.totalorder %s133_s14, %s388_s3 }
  0x33   : > { %p385_p6 = pnand %p383_p3, %p371_p13  ;;  %p391_p5 = scmp.lt.s32.totalorder %s389_s4, %s382_s27 }
  0x35   : > { %p386_p9 = pneg %p385_p6  ;;  %p392_p4 = por %p391_p5, %p390_p12 }
  0x37   : > { %p393_p8 = pnand %p392_p4, %p386_p9 }
  0x39   : > { %396 = shalt.err (!%p393_p8)
}
  0x3a   : > { %301 = dma.hbm_to_vmem [thread:$0]  (!%p583_p11), %s581_s7, 128, %s133_s14, %s122_s19  }
  0x3b   : > { %p666_p7 = scmp.ne.s32.totalorder %s660_s17, 0 }
  0x3c   : > { %p667_p10 = scmp.eq.s32.totalorder (!%p666_p7), %s506_s13, 0 }
  0x3d   : > { %141 = sbr.rel (%p666_p7) target bundleno = 96 (0x60), region = 28 }
  0x42   : > { %440 = dma.done.wait (%p667_p10), [#allocation3], 128   ;;  %p668_p6 = pmov %p667_p10 }
  0x43   : > { %s608_s5 = sand.u32 1, %s457_s10   ;;  %p669_p4 = scmp.ne.s32.totalorder %s658_s15, 0 }
  0x44   : > { %442 = vsyncadd (%p668_p6), [#allocation3], 4294967168  ;;  %s280_s6 = sshll.u32 %s608_s5, 3  ;;  %s148_s8 = scalar_lea.sflag [#allocation6], %s608_s5 }
  0x45   : > { %s151_s18 = scalar_lea.vmem [#allocation5], %s280_s6 }
  0x46   : > { %444 = dma.done.wait (%p669_p4), %s148_s8, 128  }
  0x47   : > { %446 = vsyncadd (%p669_p4), %s148_s8, 4294967168  ;;  %s171_s17 = scalar_lea.vmem [#allocation7], %s280_s6  ;;  %s283_s14 = sshll.u32 %s506_s13, 7  ;;  %v172_v0 = vld [vmem:[%s151_s18] sm:$0xff]  ;;  %v173_v1 = vld [vmem:[#allocation2] sm:$0xff] }
  0x48   : > { %s190_s7 = sshll.u32 %s171_s17, 4  ;;  %v174_v2 = vadd.f32 %v173_v1, %v172_v0  ;;  %s188_s22 = scalar_lea.hbm %s653_s2, %s283_s14  ;;  %s191_s7 = int_to_ptr.vmem [resolvable:$true] %s190_s7 }
  0x49   : > { %s177_s23 = scalar_lea.sflag [#allocation4], %s608_s5  ;;  %s397_s24 = scalar_lea.vmem %s191_s7, 128 }
  0x4a   : > { %175 = vst [vmem:[%s171_s17] sm:$0xff] %v174_v2  ;;  %p398_p8 = scmp.ne.s32.totalorder %s191_s7, %s397_s24  ;;  %p670_p9 = scmp.ne.s32.totalorder %s664_s29, 0 }
  0x4b   : > { %s469_s15 = smov [#allocation7]  }
  0x4c   : > { %p399_p11 = pnand %p398_p8, %p670_p9  ;;  %s401_s25 = sshll.u32 %s469_s15, 4  ;;  %s402_s25 = int_to_ptr.vmem [resolvable:$false] %s401_s25 }
  0x4d   : > { %s403_s26 = scalar_lea.vmem %s402_s25, 256  ;;  %p404_p1 = scmp.lt.s32.totalorder %s191_s7, %s402_s25 }
  0x4e   : > { %p400_p13 = pneg %p399_p11  ;;  %p405_p2 = scmp.lt.s32.totalorder %s403_s26, %s397_s24 }
  0x50   : > { %p406_p0 = por %p405_p2, %p404_p1 }
  0x52   : > { %p407_p3 = pnand %p406_p0, %p400_p13 }
  0x54   : > { %410 = shalt.err (!%p407_p3)
}
  0x55   : > { %s411_s13 = scalar_lea.hbm %s188_s22, 128  ;;  %s415_s3 = scalar_lea.hbm %s653_s2, 256 }
  0x56   : > { %p412_p12 = scmp.ne.s32.totalorder %s188_s22, %s411_s13  ;;  %p416_p10 = scmp.lt.s32.totalorder %s188_s22, %s653_s2 }
  0x57   : > { %p417_p6 = scmp.lt.s32.totalorder %s415_s3, %s411_s13 }
  0x58   : > { %p413_p5 = pnand %p412_p12, %p670_p9 }
  0x59   : > { %p418_p4 = por %p417_p6, %p416_p10 }
  0x5a   : > { %p414_p7 = pneg %p413_p5 }
  0x5c   : > { %p419_p8 = pnand %p418_p4, %p414_p7 }
  0x5e   : > { %422 = shalt.err (!%p419_p8)
}
  0x5f   : > { %292 = dma.vmem_to_hbm [thread:$0]  (%p670_p9), %s191_s7, 128, %s188_s22, %s177_s23  }
  0x60 PF: > { %s202_s6 = sand.u32 1, %s453_s9   ;;  %p671_p11 = scmp.ne.s32.totalorder %s659_s16, 0 }
  0x61   : > { %p672_p13 = scmp.ge.s32.totalorder %s465_s12, 2  ;;  %s203_s8 = scalar_lea.sflag [#allocation4], %s202_s6 }
  0x63   : > { %p303_p1 = pnand %p672_p13, %p671_p11 }
  0x65   : > { %p304_p2 = pneg %p303_p1 }
  0x67   : > { %448 = dma.done.wait (%p304_p2), %s203_s8, 128  }
  0x68   : > { %450 = vsyncadd (%p304_p2), %s203_s8, 4294967168  ;;  %p16_p0 = scmp.ge.s32.totalorder %s533_s20, 4   ;;  %s673_s9 = smov %s457_s10 }
  0x69   : > { %s674_s10 = smov %s461_s11  ;;  %s675_s11 = smov %s560_s28 }
  0x6a   : > { %s676_s12 = smov %s533_s20  ;;  %18 = sbr.rel (!%p16_p0) target bundleno = 6 (0x6), region = 78 }
  0x6f   :  { %208 = vsyncpa [#allocation3], 1 }
  0x70   :  { %210 = vsyncpa [#allocation3 + $0x1], 1 }
  0x71   :  { %211 = vsyncpa [#allocation6], 1 }
  0x72   :  { %213 = vsyncpa [#allocation6 + $0x1], 1 }
  0x73   :  { %214 = vsyncpa [#allocation4], 1 }
  0x74   :  { %216 = vsyncpa [#allocation4 + $0x1], 1 }

// kernel: _mlp_dwbn_nhwc.1
= control target key start
LH: loop header
LB: loop body
LE: loop exit
PB: predicated region body
PF: predicated region fallthrough
CT: control target
= control target key end

     0   :  { %s3134_s30 = smov 0   ;;  %s3136_s10 = smov 0   ;;  %s4130_s0 = inlined_call_operand.vmem [shape: bf16[2,16,16,128], index: 0, kind: input, shape index: {}, may-alias: {0,1,2}]   ;;  %s4131_s1 = inlined_call_operand.vmem [shape: bf16[2,16,16,128], index: 1, kind: input, shape index: {}, may-alias: {0,1,2}]   ;;  %s4132_s2 = inlined_call_operand.vmem [shape: bf16[2,16,16,128], index: 2, kind: input, shape index: {}, may-alias: {0,1,2}]   ;;  %s4133_s3 = inlined_call_operand.vmem [shape: bf16[128,128], index: 3, kind: input, shape index: {}]   ;;  %s4134_s4 = inlined_call_operand.vmem [shape: f32[1,128], index: 4, kind: input, shape index: {}]   ;;  %s4135_s5 = inlined_call_operand.vmem [shape: bf16[9,128], index: 5, kind: input, shape index: {}]   ;;  %s4136_s6 = inlined_call_operand.vmem [shape: f32[1,128], index: 6, kind: input, shape index: {}]   ;;  %s4137_s7 = inlined_call_operand.vmem [shape: bf16[128,128], index: 7, kind: input, shape index: {}]   ;;  %s4138_s8 = inlined_call_operand.vmem [shape: f32[1,128], index: 8, kind: input, shape index: {}]   ;;  %s4139_s9 = inlined_call_operand.vmem [shape: f32[2,256,128], index: 9, kind: output, shape index: {}]  }
   0x1   :  { %s3138_s11 = smov 0   ;;  %s3140_s12 = smov 0  }
   0x2   :  { %s3142_s13 = smov 0  }
   0x3 LB: > { %s28_s14 = sadd.s32 1, %s3072_s11  ;;  %s31_s15 = sadd.s32 1, %s3076_s12  ;;  %s3080_s13 = sphi %s3142_s13, %s19_s13   ;;  %s3076_s12 = sphi %s3140_s12, %s4158_s12   ;;  %s3072_s11 = sphi %s3138_s11, %s4157_s11   ;;  %s3068_s10 = sphi %s3136_s10, %s4156_s10   ;;  %s3064_s30 = sphi %s3134_s30, %s4155_s30  }
   0x4   : > { %p29_p0 = scmp.ge.s32.totalorder %s28_s14, 2  ;;  %p2538_p1 = scmp.ge.s32.totalorder %s3080_s13, 1 }
   0x5   : > { %p373_p2 = scmp.lt.s32.totalorder %s3080_s13, 5 }
   0x6   : > { %s4160_s14 = smov (%p29_p0, %s28_s14), 0  ;;  %s4162_s15 = smov (!%p29_p0, %s31_s15), %s3076_s12 }
   0x7   : > { %p374_p3 = pnand %p2538_p1, %p373_p2  ;;  %p33_p4 = scmp.ge.s32.totalorder %s4162_s15, 2 }
   0x8   : > { %s3184_s20 = sshll.u32 (!%p374_p3), %s3064_s30, 3  ;;  %p445_p5 = scmp.lt.s32.totalorder (!%p374_p3), %s3068_s10, 1 }
   0x9   : > { %s4164_s15 = smov (%p33_p4, %s4162_s15), 0  ;;  %377 = sbr.rel (%p374_p3) target bundleno = 698 (0x2ba), region = 56 }
   0xa   : > { %p447_p6 = scmp.lt.s32.totalorder (!%p374_p3), %s3184_s20, 15  ;;  %s2544_s28 = sadd.s32 (!%p374_p3), 4294967295, %s3184_s20 }
   0xb   : > { %p457_p7 = scmp.gt.s32.totalorder (!%p374_p3), %s2544_s28, 0  ;;  %p2545_p8 = scmp.lt.s32.totalorder (!%p374_p3), %s2544_s28, 15 }
   0xc   : > { %s2630_s22 = sadd.s32 (!%p374_p3), 8, %s3184_s20  ;;  %p940_p10 = scmp.eq.s32.totalorder (!%p374_p3), %s3064_s30, 0 }
   0xd   : > { %p3225_p9 = scmp.lt.s32.totalorder (!%p374_p3), %s2630_s22, 15  ;;  %p945_p11 = scmp.eq.s32.totalorder (!%p374_p3), %s3064_s30, 1 }
   0xe   : > { %v3171_v0 = vld [vmem:[%s4133_s3 + $0x38] sm:$0xff]   ;;  %v3082_v1 = vmov 0.0   ;;  %v3177_v2 = vld [vmem:[%s4133_s3 + $0x30] sm:$0xff]   ;;  %v3191_v3 = vld [vmem:[%s4133_s3 + $0x28] sm:$0xff]   ;;  %vm3083_vm0 = vmmov 0   ;;  %s4166_s10 = smov (!%p445_p5, %s3068_s10), 1  ;;  %v1143_v52 = vlaneseq }
   0xf   : > { %2777 = vmatprep.subr.bf16.mxu1 %v3082_v1  ;;  %2745 = vmatprep.subr.bf16.mxu0 %v3171_v0  ;;  %s448_s23 = scalar_select %p447_p6, %s3184_s20, 15  ;;  %v3207_v4 = vld [vmem:[%s4133_s3 + $0x20] sm:$0xff]   ;;  %v2895_v5 = vld [vmem:[%s4133_s3 + $0x18] sm:$0xff]   ;;  %v2896_v7 = vld [vmem:[%s4133_s3 + $0x10] sm:$0xff]   ;;  %vm1075_vm1 = vcmask 1040384   ;;  %vm1042_vm4 = vcmask 1043459  }
  0x10   : > { %2778 = vmatpush3.bf16.msra.mxu1 %v3171_v0  ;;  %2746 = vmatpush3.bf16.msra.mxu0 %v3171_v0  ;;  %s3201_s24 = sshll.u32 %s4166_s10, 5  ;;  %s4168_s28 = smov (!%p457_p7, %s2544_s28), 0  ;;  %v2897_v8 = vld [vmem:[%s4133_s3 + $0x8] sm:$0xff]   ;;  %v2898_v9 = vld [vmem:[%s4133_s3] sm:$0xff]   ;;  %vm1076_vm2 = vsmask.f32 256 }
  0x11   : > { %2779 = vmatprep.subr.bf16.mxu1 %v3082_v1  ;;  %2747 = vmatprep.subr.bf16.mxu0 %v3177_v2  ;;  %s2540_s27 = sshll.u32 %s448_s23, 1  ;;  %s4170_s28 = smov (!%p2545_p8, %s4168_s28), 15  ;;  %vm3285_vm3 = vmand %vm1075_vm1, %vm1076_vm2  ;;  %v1078_v20 = vld [vmem:[#allocation2 + $0x10] sm:$0x1]  ;;  %v1081_v21 = vld [vmem:[#allocation2 + $0x28] sm:$0x1] }
  0x12   : > { %2793 = vmatprep.mubr.msk.bf16.mxu1 %vm3083_vm0, %v3082_v1  ;;  %s451_s29 = sadd.s32 %s3201_s24, %s2540_s27  ;;  %s4172_s22 = smov (!%p3225_p9, %s2630_s22), 15  ;;  %vm1043_vm5 = vsmask.f32 7950  ;;  %v1079_v22 = vsel %vm3285_vm3, 0, %v1078_v20  ;;  %v1082_v23 = vsel %vm3285_vm3, 0, %v1081_v21  ;;  %v2909_v37 = vld [vmem:[%s4137_s7 + $0x38] sm:$0xff]  }
  0x13   : > { %s2542_s16 = sshll.u32 %s451_s29, 2  ;;  %s2550_s26 = sshll.u32 %s4170_s28, 1  ;;  %vm3293_vm6 = vmand %vm1042_vm4, %vm1043_vm5  ;;  %v1045_v25 = vld [vmem:[#allocation2 + $0x4] sm:$0x8]  ;;  %v1048_v26 = vld [vmem:[#allocation2 + $0x1c] sm:$0x8] }
  0x14   : > { %2780 = vmatpush3.bf16.msra.mxu1 %v3177_v2  ;;  %2748 = vmatpush3.bf16.msra.mxu0 %v3177_v2  ;;  %s3220_s21 = scalar_lea.vmem %s4130_s0, %s2542_s16  ;;  %s465_s27 = sadd.s32 %s2550_s26, %s3201_s24  ;;  %1080 = vst [vmem:[#allocation2 + $0x10] sm:$0x1] %v1079_v22  ;;  %1083 = vst [vmem:[#allocation2 + $0x28] sm:$0x1] %v1082_v23  ;;  %v1046_v27 = vsel %vm3293_vm6, 0, %v1045_v25  ;;  %v1049_v28 = vsel %vm3293_vm6, 0, %v1048_v26 }
  0x15   : > { %2781 = vmatprep.subr.bf16.mxu1 %v3082_v1  ;;  %2749 = vmatprep.subr.bf16.mxu0 %v3191_v3  ;;  %v2899_v6 = vld [vmem:[%s3220_s21] sm:$0xff]   ;;  %s2552_s29 = sshll.u32 %s465_s27, 2  ;;  %s4174_s22 = smov (!%p3225_p9, %s4172_s22), 15  ;;  %v2901_v11 = vld [vmem:[%s3220_s21 + $0x8] sm:$0xff]   ;;  %v2902_v12 = vld [vmem:[%s3220_s21 + $0x10] sm:$0xff]   ;;  %v1144_v55 = vshrl.u32 %v1143_v52, 7 }
  0x16   : > { %2761 = vmatprep.mubr.bf16.mxu0 %v2899_v6  ;;  %s467_s17 = scalar_lea.vmem %s4131_s1, %s2552_s29  ;;  %s2557_s28 = sshll.u32 %s4174_s22, 1  ;;  %v2903_v13 = vld [vmem:[%s3220_s21 + $0x18] sm:$0xff]   ;;  %v2904_v14 = vld [vmem:[%s3220_s21 + $0x20] sm:$0xff]   ;;  %v2905_v15 = vld [vmem:[%s3220_s21 + $0x28] sm:$0xff]   ;;  %1047 = vst [vmem:[#allocation2 + $0x4] sm:$0x8] %v1046_v27 }
  0x17   : > { %s482_s20 = sadd.s32 %s2557_s28, %s3201_s24  ;;  %v2900_v10 = vld [vmem:[%s467_s17] sm:$0xff]   ;;  %v2906_v16 = vld [vmem:[%s3220_s21 + $0x30] sm:$0xff]   ;;  %v2907_v17 = vld [vmem:[%s3220_s21 + $0x38] sm:$0xff]   ;;  %1050 = vst [vmem:[#allocation2 + $0x1c] sm:$0x8] %v1049_v28  ;;  %v1180_v59 = vsub.s32 1, %v1144_v55 }
  0x18   : > { %2782 = vmatpush3.bf16.msra.mxu1 %v3191_v3  ;;  %2750 = vmatpush3.bf16.msra.mxu0 %v3191_v3  ;;  %s3252_s27 = sshll.u32 %s482_s20, 2  ;;  %v1084_v29 = vld [vmem:[#allocation2 + $0x40] sm:$0x1]  ;;  %v1051_v30 = vld [vmem:[#allocation2 + $0x34] sm:$0x8]  ;;  %v2911_v39 = vld [vmem:[%s4137_s7 + $0x28] sm:$0xff]  }
  0x19   : > { %2783 = vmatprep.subr.bf16.mxu1 %v3082_v1  ;;  %2751 = vmatprep.subr.bf16.mxu0 %v3207_v4  ;;  %s484_s23 = scalar_lea.vmem %s4132_s2, %s3252_s27  ;;  %v1085_v31 = vsel %vm3285_vm3, 0, %v1084_v29  ;;  %v1052_v32 = vsel %vm3293_vm6, 0, %v1051_v30  ;;  %v1087_v33 = vld [vmem:[#allocation2 + $0x58] sm:$0x1]  ;;  %v1054_v35 = vld [vmem:[#allocation2 + $0x4c] sm:$0x8] }
  0x1a   : > { %v2908_v18 = vld [vmem:[%s484_s23] sm:$0xff]   ;;  %1086 = vst [vmem:[#allocation2 + $0x40] sm:$0x1] %v1085_v31  ;;  %1053 = vst [vmem:[#allocation2 + $0x34] sm:$0x8] %v1052_v32  ;;  %v1088_v34 = vsel %vm3285_vm3, 0, %v1087_v33 }
  0x1b   : > { %1089 = vst [vmem:[#allocation2 + $0x58] sm:$0x1] %v1088_v34  ;;  %v1055_v36 = vsel %vm3293_vm6, 0, %v1054_v35  ;;  %v2910_v38 = vld [vmem:[%s4137_s7 + $0x30] sm:$0xff]   ;;  %v2912_v40 = vld [vmem:[%s4137_s7 + $0x20] sm:$0xff]   ;;  %v2913_v44 = vld [vmem:[%s4137_s7 + $0x18] sm:$0xff]  }
  0x1c   : > { %2784 = vmatpush3.bf16.msra.mxu1 %v3207_v4  ;;  %2752 = vmatpush3.bf16.msra.mxu0 %v3207_v4  ;;  %1056 = vst [vmem:[#allocation2 + $0x4c] sm:$0x8] %v1055_v36  ;;  %v1090_v41 = vld [vmem:[#allocation2 + $0x70] sm:$0x1]  ;;  %v1057_v43 = vld [vmem:[#allocation2 + $0x64] sm:$0x8] }
  0x1d   : > { %2785 = vmatprep.subr.bf16.mxu1 %v3082_v1  ;;  %2753 = vmatprep.subr.bf16.mxu0 %v2895_v5  ;;  %v1091_v42 = vsel %vm3285_vm3, 0, %v1090_v41  ;;  %v1058_v45 = vsel %vm3293_vm6, 0, %v1057_v43  ;;  %v2914_v46 = vld [vmem:[%s4137_s7 + $0x10] sm:$0xff]   ;;  %v2915_v47 = vld [vmem:[%s4137_s7 + $0x8] sm:$0xff]   ;;  %v1060_v50 = vld [vmem:[#allocation2 + $0x7c] sm:$0x8] }
  0x1e   : > { %1092 = vst [vmem:[#allocation2 + $0x70] sm:$0x1] %v1091_v42  ;;  %1059 = vst [vmem:[#allocation2 + $0x64] sm:$0x8] %v1058_v45  ;;  %v1093_v48 = vld [vmem:[#allocation2 + $0x88] sm:$0x1] }
  0x1f   : > { %v1094_v49 = vsel %vm3285_vm3, 0, %v1093_v48  ;;  %v1061_v51 = vsel %vm3293_vm6, 0, %v1060_v50  ;;  %v1108_v53 = vld [vmem:[%s4135_s5] sm:$0xf]  ;;  %v1316_v60 = vsub.s32 2, %v1144_v55  ;;  %v1145_v62 = vsub.s32 0, %v1144_v55 }
  0x20   : > { %2786 = vmatpush3.bf16.msra.mxu1 %v2895_v5  ;;  %2754 = vmatpush3.bf16.msra.mxu0 %v2895_v5  ;;  %1095 = vst [vmem:[#allocation2 + $0x88] sm:$0x1] %v1094_v49  ;;  %1062 = vst [vmem:[#allocation2 + $0x7c] sm:$0x8] %v1061_v51  ;;  %v2916_v54 = vld [vmem:[%s4137_s7] sm:$0xff]   ;;  %v1175_v56 = vshrl.u32 %v1108_v53, 16  ;;  %v1141_v57 = vpack.i.b16 %v1108_v53, %v1108_v53 }
  0x21   : > { %2787 = vmatprep.subr.bf16.mxu1 %v3082_v1  ;;  %2755 = vmatprep.subr.bf16.mxu0 %v2896_v7  ;;  %v1109_v61 = vld [vmem:[%s4135_s5 + $0x4] sm:$0x1]  ;;  %v1116_v29 = vld [vmem:[#allocation2 + $0x34] sm:$0x8]  ;;  %s3369_s25 = scalar_select %p940_p10, 1, 0 }
  0x22   : > { %v1176_v58 = vpack.i.b16 %v1175_v56, %v1175_v56  ;;  %v1407_v63 = vrot.slane %v1141_v57, %v1180_v59  ;;  %v1397_v31 = vld [vmem:[#allocation2 + $0x58] sm:$0x1]  ;;  %v1317_v41 = vrot.slane %v1141_v57, %v1316_v60  ;;  %s3401_s29 = scalar_select %p945_p11, 1, 0  ;;  %vm1607_vm8 = vcmask 1046528  }
  0x23   : > { %v1119_v43 = vld [vmem:[#allocation2 + $0x4c] sm:$0x8]  ;;  %vm1728_vm9 = vcmask 1045504   ;;  %vm1984_vm11 = vsmask.f32 4352  ;;  %s2560_s18 = sshll.u32 %s3064_s30, 4 }
  0x24   : > { %2788 = vmatpush3.bf16.msra.mxu1 %v2896_v7  ;;  %2756 = vmatpush3.bf16.msra.mxu0 %v2896_v7  ;;  %v1181_v6 = vrot.slane %v1176_v58, %v1180_v59  ;;  %v3397_v59 = vld [vmem:[%s4134_s4] ss:$0 sm:$0xff]  ;;  %p492_p12 = scmp.lt.s32.totalorder %s2560_s18, 31 }
  0x25   : > { %2789 = vmatprep.subr.bf16.mxu1 %v3082_v1  ;;  %2757 = vmatprep.subr.bf16.mxu0 %v2897_v8 }
  0x26   : > { %v3359_v21 = vcombine.low %v1181_v6, %v1181_v6  ;;  %s4176_s18 = smov (!%p492_p12, %s2560_s18), 31 }
  0x27   : > { %v3388_v53 = vld [vmem:[#allocation2 + $0x88] sm:$0x1]  ;;  %s495_s30 = sadd.s32 %s3201_s24, %s4176_s18 }
  0x28   : > { %2790 = vmatpush3.bf16.msra.mxu1 %v2897_v8  ;;  %2758 = vmatpush3.bf16.msra.mxu0 %v2897_v8  ;;  %v1189_v50 = vmul.bf16 %v3359_v21, %v1116_v29  ;;  %v1192_v56 = vmul.bf16 %v3359_v21, %v1119_v43  ;;  %s2562_s19 = sshll.u32 %s495_s30, 3 }
  0x29   : > { %2791 = vmatprep.subr.bf16.mxu1 %v3082_v1  ;;  %2759 = vmatprep.subr.bf16.mxu0 %v2898_v9 }
  0x2c   : > { %2792 = vmatpush3.bf16.msra.mxu1 %v2898_v9  ;;  %2760 = vmatpush3.bf16.msra.mxu0 %v2898_v9 }
  0x2d   : > { %2797 = vmatprep.subr.bf16.mxu0 %v3082_v1  ;;  %2817 = vmatprep.subr.bf16.mxu1 %v2909_v37 }
  0x2f   : > { %2794 = vmatmul.mubr.bf16.vlgmr.msra.gmra.mxu1 %v2900_v10  ;;  %2762 = vmatmul.mubr.bf16.vlgmr.msra.gmra.mxu0 %v2901_v11  ;;  %v3349_v10 = vcombine.low %v1407_v63, %v1407_v63 }
  0x30   : > { %2798 = vmatpush3.bf16.msra.mxu0 %v3171_v0  ;;  %2765 = vmatprep.mubr.bf16.mxu0 %v2902_v12  ;;  %v1439_v0 = vrot.slane %v1176_v58, %v1316_v60 }
  0x31   : > { %2799 = vmatprep.subr.bf16.mxu0 %v3082_v1  ;;  %2818 = vmatpush3.bf16.msra.mxu1 %v2909_v37 }
  0x32   : > { %2819 = vmatprep.subr.bf16.mxu1 %v2910_v38  ;;  %v3351_v11 = vcombine.low %v1439_v0, %v1439_v0  ;;  %v3409_v0 = vcombine.low %v1317_v41, %v1317_v41 }
  0x34   : > { %2800 = vmatpush3.bf16.msra.mxu0 %v3177_v2  ;;  %v1096_v2 = vld [vmem:[#allocation2 + $0xa0] sm:$0x1] }
  0x35   : > { %2801 = vmatprep.subr.bf16.mxu0 %v3082_v1  ;;  %2820 = vmatpush3.bf16.msra.mxu1 %v2910_v38  ;;  %v1452_v38 = vmul.bf16 %v3351_v11, %v1397_v31 }
  0x36   : > { %2821 = vmatprep.subr.bf16.mxu1 %v2911_v39 }
  0x37   : > { %2766 = vmatmul.mubr.bf16.gmra.mxu0 %v2903_v13 }
  0x38   : > { %2802 = vmatpush3.bf16.msra.mxu0 %v3191_v3  ;;  %2769 = vmatprep.mubr.bf16.mxu0 %v2904_v14  ;;  %v1236_v3 = vsub.s32 3, %v1144_v55 }
  0x39   : > { %2803 = vmatprep.subr.bf16.mxu0 %v3082_v1  ;;  %2822 = vmatpush3.bf16.msra.mxu1 %v2911_v39  ;;  %v942_v39 = vstv %s3369_s25  ;;  %s4085_s25 = scalar_lea.vmem %s4139_s9, %s2562_s19 }
  0x3a   : > { %2823 = vmatprep.subr.bf16.mxu1 %v2912_v40  ;;  %v1237_v22 = vrot.slane %v1141_v57, %v1236_v3  ;;  %v1357_v42 = vrot.slane %v1176_v58, %v1236_v3  ;;  %vm3489_vm7 = vcmp.eq.s32.totalorder %v942_v39, 1 }
  0x3c   : > { %2804 = vmatpush3.bf16.msra.mxu0 %v3207_v4  ;;  %v1097_v4 = vsel %vm3285_vm3, 0, %v1096_v2  ;;  %v3367_v30 = vcombine.low %v1237_v22, %v1237_v22  ;;  %v3412_v2 = vld [vmem:[#allocation2 + $0x7c] sm:$0x8]  ;;  %v947_v22 = vstv %s3401_s29 }
  0x3d   : > { %2805 = vmatprep.subr.bf16.mxu0 %v3082_v1  ;;  %2824 = vmatpush3.bf16.msra.mxu1 %v2912_v40  ;;  %1098 = vst [vmem:[#allocation2 + $0xa0] sm:$0x1] %v1097_v4  ;;  %v1293_v40 = vrot.slane %v1176_v58, %v1145_v62  ;;  %vm3601_vm10 = vcmp.eq.s32.totalorder %v947_v22, 1 }
  0x3e   : > { %2825 = vmatprep.subr.bf16.mxu1 %v2913_v44  ;;  %v1242_v33 = vmul.bf16 %v3367_v30, %v1116_v29 }
  0x3f   : > { %2770 = vmatmul.mubr.bf16.gmra.mxu0 %v2905_v15  ;;  %v3403_v60 = vcombine.low %v1293_v40, %v1293_v40 }
  0x40   : > { %2806 = vmatpush3.bf16.msra.mxu0 %v2895_v5  ;;  %2773 = vmatprep.mubr.bf16.mxu0 %v2906_v16  ;;  %v1146_v5 = vrot.slane %v1141_v57, %v1145_v62  ;;  %v1110_v16 = vld [vmem:[#allocation2 + $0x4] sm:$0x8] }
  0x41   : > { %2807 = vmatprep.subr.bf16.mxu0 %v3082_v1  ;;  %2826 = vmatpush3.bf16.msra.mxu1 %v2913_v44  ;;  %v3378_v44 = vld [vmem:[#allocation2 + $0x70] sm:$0x1] }
  0x42   : > { %2827 = vmatprep.subr.bf16.mxu1 %v2914_v46  ;;  %v3357_v20 = vcombine.low %v1146_v5, %v1146_v5  ;;  %v1455_v48 = vmul.bf16 %v3351_v11, %v3378_v44 }
  0x44   : > { %2808 = vmatpush3.bf16.msra.mxu0 %v2896_v7  ;;  %v1394_v7 = vld [vmem:[#allocation2 + $0x10] sm:$0x1]  ;;  %v1151_v25 = vmul.bf16 %v3357_v20, %v1110_v16  ;;  %v1157_v55 = vmul.bf16 %v3357_v20, %v1116_v29 }
  0x45   : > { %2809 = vmatprep.subr.bf16.mxu0 %v3082_v1  ;;  %2828 = vmatpush3.bf16.msra.mxu1 %v2914_v46  ;;  %v1414_v14 = vmul.bf16 %v3349_v10, %v1394_v7 }
  0x46   : > { %2829 = vmatprep.subr.bf16.mxu1 %v2915_v47 }
  0x47   : > { %2774 = vmatmul.mubr.bf16.gmra.mxu0 %v2907_v17  ;;  %v1113_v17 = vld [vmem:[#allocation2 + $0x1c] sm:$0x8] }
  0x48   : > { %2810 = vmatpush3.bf16.msra.mxu0 %v2897_v8  ;;  %2813 = vmatprep.mubr.msk.bf16.mxu0 %vm3083_vm0, %v3082_v1  ;;  %v1395_v8 = vld [vmem:[#allocation2 + $0x28] sm:$0x1]  ;;  %v1186_v26 = vmul.bf16 %v3359_v21, %v1113_v17  ;;  %v1154_v49 = vmul.bf16 %v3357_v20, %v1113_v17 }
  0x49   : > { %2811 = vmatprep.subr.bf16.mxu0 %v3082_v1  ;;  %2830 = vmatpush3.bf16.msra.mxu1 %v2915_v47  ;;  %v1493_v1 = vpack.i.b16 %v1109_v61, %v1109_v61  ;;  %v1446_v15 = vmul.bf16 %v3351_v11, %v1395_v8  ;;  %v1417_v35 = vmul.bf16 %v3349_v10, %v1395_v8 }
  0x4a   : > { %2831 = vmatprep.subr.bf16.mxu1 %v2916_v54  ;;  %v1210_v32 = vadd.bf16 %v1186_v26, %v1151_v25  ;;  %v1423_v47 = vmul.bf16 %v3349_v10, %v1397_v31  ;;  %v3405_v61 = vcombine.low %v1357_v42, %v1357_v42  ;;  %v1213_v7 = vadd.bf16 %v1189_v50, %v1154_v49  ;;  %v1099_v50 = vld [vmem:[#allocation2 + $0xb8] sm:$0x1] }
  0x4b   : > { %v1498_v12 = vrot.slane %v1493_v1, %v1145_v62  ;;  %v1470_v27 = vadd.bf16 %v1446_v15, %v1414_v14  ;;  %v1160_v62 = vmul.bf16 %v3357_v20, %v1119_v43  ;;  %v1245_v8 = vmul.bf16 %v3367_v30, %v1119_v43 }
  0x4c   : > { %2812 = vmatpush3.bf16.msra.mxu0 %v2898_v9  ;;  %v1063_v9 = vld [vmem:[#allocation2 + $0x94] sm:$0x8]  ;;  %v3380_v45 = vadd.bf16 %v1242_v33, %v1210_v32  ;;  %v1479_v3 = vadd.bf16 %v1455_v48, %v1423_v47  ;;  %v1216_v14 = vadd.bf16 %v1192_v56, %v1157_v55  ;;  %v1251_v26 = vmul.bf16 %v3367_v30, %v3412_v2 }
  0x4d   : > { %2832 = vmatpush3.bf16.msra.mxu1 %v2916_v54  ;;  %v1064_v13 = vsel %vm3293_vm6, 0, %v1063_v9  ;;  %v3361_v23 = vcombine.low %v1498_v12, %v1498_v12  ;;  %v1122_v54 = vld [vmem:[#allocation2 + $0x64] sm:$0x8]  ;;  %v1198_v32 = vmul.bf16 %v3359_v21, %v3412_v2  ;;  %v1100_v56 = vsel %vm3285_vm3, 0, %v1099_v50 }
  0x4e   : > { %1065 = vst [vmem:[#allocation2 + $0x94] sm:$0x8] %v1064_v13  ;;  %v1195_v63 = vmul.bf16 %v3359_v21, %v1122_v54  ;;  %v1248_v15 = vmul.bf16 %v3367_v30, %v1122_v54  ;;  %1101 = vst [vmem:[#allocation2 + $0xb8] sm:$0x1] %v1100_v56 }
  0x4f   : > { %2814 = vmatmul.mubr.bf16.vlgmr.msra.gmra.mxu0 %v2908_v18  ;;  %v1396_v18 = vld [vmem:[#allocation2 + $0x40] sm:$0x1]  ;;  %v1508_v52 = vmul.bf16 %v3361_v23, %v1397_v31  ;;  %v1511_v58 = vmul.bf16 %v3361_v23, %v3378_v44  ;;  %v1514_v4 = vmul.bf16 %v3361_v23, %v3388_v53  ;;  %v1163_v31 = vmul.bf16 %v3357_v20, %v1122_v54 }
  0x50   : > { %v1505_v28 = vmul.bf16 %v3361_v23, %v1396_v18  ;;  %v1449_v36 = vmul.bf16 %v3351_v11, %v1396_v18  ;;  %v1420_v37 = vmul.bf16 %v3349_v10, %v1396_v18  ;;  %v1219_v25 = vadd.bf16 %v1195_v63, %v1160_v62  ;;  %v3450_v63 = vld [vmem:[#allocation2 + $0xa0] sm:$0x1] }
  0x51   : > { %v1538_v29 = vadd.bf16 %v1514_v4, %v1479_v3  ;;  %v3438_v41 = vadd.bf16 %v1248_v15, %v1216_v14  ;;  %v1222_v55 = vadd.bf16 %v1198_v32, %v1163_v31  ;;  %v1066_v3 = vld [vmem:[#allocation2 + $0xac] sm:$0x8] }
  0x52   : > { %v1529_v34 = vadd.bf16 %v1505_v28, %v1470_v27  ;;  %v1473_v51 = vadd.bf16 %v1449_v36, %v1417_v35  ;;  %v1476_v57 = vadd.bf16 %v1452_v38, %v1420_v37  ;;  %v3435_v36 = vadd.bf16 %v1245_v8, %v1213_v7 }
  0x53   : > { %v3443_v49 = vadd.bf16 %v1251_v26, %v1219_v25  ;;  %v1691_v54 = vunpack.c.l.bf16 %v1538_v29  ;;  %v1458_v7 = vmul.bf16 %v3351_v11, %v3388_v53  ;;  %v1067_v8 = vsel %vm3293_vm6, 0, %v1066_v3 }
  0x54   : > { %v1682_v46 = vunpack.c.l.bf16 %v1529_v34  ;;  %v1532_v9 = vadd.bf16 %v1508_v52, %v1473_v51  ;;  %v1535_v16 = vadd.bf16 %v1511_v58, %v1476_v57  ;;  %1068 = vst [vmem:[#allocation2 + $0xac] sm:$0x8] %v1067_v8 }
  0x55   : > { %v3440_v43 = vld [vmem:[#allocation2 + $0x94] sm:$0x8]  ;;  %v3469_v32 = vrot.slane %v1691_v54, 2 }
  0x56   : > { %v3416_v6 = vrot.slane %v1682_v46, 2  ;;  %v1685_v37 = vunpack.c.l.bf16 %v1532_v9  ;;  %v1688_v42 = vunpack.c.l.bf16 %v1535_v16  ;;  %v1254_v62 = vmul.bf16 %v3367_v30, %v3440_v43 }
  0x58   : > { %v3460_v16 = vrot.slane %v1685_v37, 2 }
  0x5b   : > { %v1131_v3 = vld [vmem:[#allocation2 + $0xac] sm:$0x8] }
  0xef   : > { %v862_v5 = vpop.f32.mrf.mxu1  ;;  %v2763_v13 = vpop.f32.mrf.mxu0 }
  0xf0   : > { %v3420_v12 = vadd.f32 %v3397_v59, %v862_v5  ;;  %v3424_v17 = vadd.f32 %v2763_v13, %v3397_v59  ;;  %v1426_v5 = vmul.bf16 %v3349_v10, %v3378_v44  ;;  %v1517_v44 = vmul.bf16 %v3361_v23, %v3450_v63 }
  0xf1   : > { %v2795_v18 = vpop.f32.mrf.mxu1  ;;  %v669_v28 = vpop.f32.mrf.mxu0 }
  0xf2   : > { %v871_v27 = vmul.f32 0.70710677, %v3420_v12  ;;  %v750_v33 = vmul.f32 0.70710677, %v3424_v17  ;;  %v670_v34 = vadd.f32 %v3397_v59, %v669_v28  ;;  %v1482_v25 = vadd.bf16 %v1458_v7, %v1426_v5 }
  0xf3   : > { %v865_v35 = vpop.f32.mrf.mxu1  ;;  %v2764_v40 = vpop.f32.mrf.mxu0  ;;  %v3466_v28 = vrot.slane %v1688_v42, 2  ;;  %v869_v37 = vmul.f32 0.5, %v3420_v12 }
  0xf4   : > { %2917 = verf.f32 %v871_v27  ;;  %v866_v38 = vadd.f32 %v3397_v59, %v865_v35  ;;  %v748_v46 = vmul.f32 0.70710677, %v670_v34  ;;  %v681_v47 = vadd.f32 %v2764_v40, %v3397_v59 }
  0xf5   : > { %2919 = verf.f32 %v750_v33  ;;  %v2796_v48 = vpop.f32.mrf.mxu1  ;;  %v672_v52 = vpop.f32.mrf.mxu0  ;;  %v3471_v33 = vadd.bf16 %v1254_v62, %v1222_v55  ;;  %v1541_v35 = vadd.bf16 %v1517_v44, %v1482_v25  ;;  %v3476_v50 = vmul.f32 0.5, %v670_v34 }
  0xf6   : > { %v872_v51 = vmul.f32 0.70710677, %v866_v38  ;;  %2921 = verf.f32 %v748_v46  ;;  %v751_v57 = vmul.f32 0.70710677, %v681_v47  ;;  %v673_v58 = vadd.f32 %v3397_v59, %v672_v52 }
  0xf7   : > { %v2767_v4 = vpop.f32.mrf.mxu0  ;;  %v734_v48 = vmul.f32 0.5, %v3424_v17  ;;  %v870_v42 = vmul.f32 0.5, %v866_v38  ;;  %v1694_v62 = vunpack.c.l.bf16 %v1541_v35  ;;  %v1166_v17 = vmul.bf16 %v3357_v20, %v3412_v2 }
  0xf8   : > { %2923 = verf.f32 %v872_v51  ;;  %v749_v9 = vmul.f32 0.70710677, %v673_v58  ;;  %v694_v13 = vadd.f32 %v2767_v4, %v3397_v59  ;;  %v735_v51 = vmul.f32 0.5, %v681_v47 }
  0xf9   : > { %2925 = verf.f32 %v751_v57  ;;  %v685_v15 = vpop.f32.mrf.mxu0  ;;  %v3478_v56 = vmul.f32 0.5, %v673_v58  ;;  %v1201_v34 = vmul.bf16 %v3359_v21, %v3440_v43  ;;  %v1257_v43 = vmul.bf16 %v3367_v30, %v1131_v3 }
  0xfa   : > { %2927 = verf.f32 %v749_v9  ;;  %v754_v26 = vmul.f32 0.70710677, %v694_v13  ;;  %v686_v27 = vadd.f32 %v3397_v59, %v685_v15  ;;  %v3481_v57 = vmul.f32 0.5, %v694_v13 }
  0xfb   : > { %v2768_v29 = vpop.f32.mrf.mxu0  ;;  %v1225_v13 = vadd.bf16 %v1201_v34, %v1166_v17  ;;  %v1429_v25 = vmul.bf16 %v3349_v10, %v3388_v53 }
  0xfc   : > { %2929 = verf.f32 %v754_v26  ;;  %v752_v40 = vmul.f32 0.70710677, %v686_v27  ;;  %v697_v46 = vadd.f32 %v2768_v29, %v3397_v59  ;;  %v3493_v58 = vmul.f32 0.5, %v686_v27 }
  0xfd   : > { %v688_v52 = vpop.f32.mrf.mxu0  ;;  %v3508_v3 = vadd.bf16 %v1257_v43, %v1225_v13 }
  0xfe   : > { %2931 = verf.f32 %v752_v40  ;;  %v755_v54 = vmul.f32 0.70710677, %v697_v46  ;;  %v689_v55 = vadd.f32 %v3397_v59, %v688_v52  ;;  %v3496_v9 = vmul.f32 0.5, %v697_v46  ;;  %v1069_v46 = vld [vmem:[#allocation2 + $0xc4] sm:$0x8] }
  0xff   : > { %v2771_v12 = vpop.f32.mrf.mxu0  ;;  %v3505_v40 = vrot.slane %v1694_v62, 2 }
 0x100   : > { %2933 = verf.f32 %v755_v54  ;;  %v753_v4 = vmul.f32 0.70710677, %v689_v55  ;;  %v710_v5 = vadd.f32 %v2771_v12, %v3397_v59  ;;  %v3500_v26 = vmul.f32 0.5, %v689_v55 }
 0x101   : > { %v2918_v38 = vpop.eup %2917  ;;  %v701_v2 = vpop.f32.mrf.mxu0 }
 0x102   : > { %v2920_v7 = vpop.eup %2919  ;;  %v875_v8 = vadd.f32 1.0, %v2918_v38  ;;  %2935 = verf.f32 %v753_v4  ;;  %v758_v39 = vmul.f32 0.70710677, %v710_v5  ;;  %v3502_v27 = vmul.f32 0.5, %v710_v5 }
 0x103   : > { %v782_v15 = vadd.f32 1.0, %v2920_v7  ;;  %v2922_v44 = vpop.eup %2921  ;;  %v702_v29 = vadd.f32 %v3397_v59, %v701_v2  ;;  %v2772_v35 = vpop.f32.mrf.mxu0  ;;  %v1070_v5 = vsel %vm3293_vm6, 0, %v1069_v46 }
 0x104   : > { %v877_v54 = vmul.f32 %v875_v8, %v869_v37  ;;  %2937 = verf.f32 %v758_v39  ;;  %v713_v12 = vadd.f32 %v2772_v35, %v3397_v59  ;;  %v780_v34 = vadd.f32 1.0, %v2922_v44  ;;  %1071 = vst [vmem:[#allocation2 + $0xc4] sm:$0x8] %v1070_v5 }
 0x105   : > { %v2924_v52 = vpop.eup %2923  ;;  %v756_v55 = vmul.f32 0.70710677, %v702_v29  ;;  %v704_v4 = vpop.f32.mrf.mxu0  ;;  %v798_v7 = vmul.f32 %v782_v15, %v734_v48  ;;  %v3514_v39 = vmul.f32 0.5, %v702_v29 }
 0x106   : > { %v2926_v17 = vpop.eup %2925  ;;  %v876_v38 = vadd.f32 1.0, %v2924_v52  ;;  %v759_v62 = vmul.f32 0.70710677, %v713_v12  ;;  %v705_v13 = vadd.f32 %v3397_v59, %v704_v4  ;;  %v796_v15 = vmul.f32 %v780_v34, %v3476_v50 }
 0x107   : > { %v783_v2 = vadd.f32 1.0, %v2926_v17  ;;  %v2928_v37 = vpop.eup %2927  ;;  %2939 = verf.f32 %v756_v55  ;;  %v2775_v43 = vpop.f32.mrf.mxu0  ;;  %v3522_v4 = vmul.f32 0.5, %v713_v12 }
 0x108   : > { %v878_v8 = vmul.f32 %v876_v38, %v870_v42  ;;  %v781_v35 = vadd.f32 1.0, %v2928_v37  ;;  %2941 = verf.f32 %v759_v62  ;;  %v726_v46 = vadd.f32 %v2775_v43, %v3397_v59 }
 0x109   : > { %v799_v44 = vmul.f32 %v783_v2, %v735_v51  ;;  %v2930_v48 = vpop.eup %2929  ;;  %v757_v17 = vmul.f32 0.70710677, %v705_v13  ;;  %v717_v53 = vpop.f32.mrf.mxu0  ;;  %v1461_v42 = vmul.bf16 %v3351_v11, %v3450_v63  ;;  %v3527_v63 = vmul.f32 0.5, %v705_v13 }
 0x10a   : > { %v879_v52 = vpack.c.bf16 %v878_v8, %v877_v54  ;;  %v797_v38 = vmul.f32 %v781_v35, %v3478_v56  ;;  %v786_v55 = vadd.f32 1.0, %v2930_v48  ;;  %v762_v2 = vmul.f32 0.70710677, %v726_v46  ;;  %v1102_v56 = vld [vmem:[#allocation2 + $0xd0] sm:$0x1] }
 0x10b   : > { %v2655_v29 = vpack.c.bf16 %v799_v44, %v798_v7  ;;  %v2932_v51 = vpop.eup %2931  ;;  %2943 = verf.f32 %v757_v17  ;;  %v718_v50 = vadd.f32 %v3397_v59, %v717_v53  ;;  %v2776_v54 = vpop.f32.mrf.mxu0  ;;  %v1401_v7 = vld [vmem:[#allocation2 + $0xb8] sm:$0x1]  ;;  %v1485_v47 = vadd.bf16 %v1461_v42, %v1429_v25 }
 0x10c   : > { %v944_v5 = vsel %vm3489_vm7, 0, %v879_v52  ;;  %v2650_v37 = vpack.c.bf16 %v797_v38, %v796_v15  ;;  %v784_v12 = vadd.f32 1.0, %v2932_v51  ;;  %2945 = verf.f32 %v762_v2 }
 0x10d   : > { %v2582_v34 = vcombine.low %v944_v5, %v944_v5  ;;  %v2583_v62 = vcombine.high %v944_v5, %v944_v5  ;;  %2688 = vst [vmem:[#allocation2 + $0x38] sm:$0xff] %v2655_v29   ;;  %v2934_v8 = vpop.eup %2933  ;;  %v760_v43 = vmul.f32 0.70710677, %v718_v50  ;;  %v720_v44 = vpop.f32.mrf.mxu0  ;;  %v3529_v48 = vmul.f32 0.5, %v726_v46 }
 0x10e   : > { %2687 = vst [vmem:[#allocation2 + $0x20] sm:$0xff] %v2650_v37   ;;  %v787_v35 = vadd.f32 1.0, %v2934_v8  ;;  %v729_v52 = vadd.f32 %v2776_v54, %v3397_v59  ;;  %v721_v15 = vadd.f32 %v3397_v59, %v720_v44  ;;  %v802_v17 = vmul.f32 %v786_v55, %v3481_v57 }
 0x10f   : > { %957 = vst [vmem:[#allocation2 + $0x8] sm:$0xf] %v2582_v34  ;;  %958 = vst [vmem:[#allocation2 + $0xc] sm:$0xf] %v2583_v62  ;;  %v2936_v13 = vpop.eup %2935  ;;  %2947 = verf.f32 %v760_v43  ;;  %v922_v53 = vpop.f32.mrf.mxu0  ;;  %v1520_v29 = vmul.bf16 %v3361_v23, %v1401_v7  ;;  %v1103_v25 = vsel %vm3285_vm3, 0, %v1102_v56  ;;  %v3538_v51 = vmul.f32 0.5, %v718_v50 }
 0x110   : > { %v803_v42 = vmul.f32 %v787_v35, %v3496_v9  ;;  %v785_v38 = vadd.f32 1.0, %v2936_v13  ;;  %v763_v46 = vmul.f32 0.70710677, %v729_v52  ;;  %1104 = vst [vmem:[#allocation2 + $0xd0] sm:$0x1] %v1103_v25  ;;  %v800_v2 = vmul.f32 %v784_v12, %v3493_v58 }
 0x111   : > { %v2938_v5 = vpop.eup %2937  ;;  %v761_v54 = vmul.f32 0.70710677, %v721_v15  ;;  %v923_v57 = vadd.f32 %v3397_v59, %v922_v53  ;;  %v2815_v55 = vpop.f32.mrf.mxu0  ;;  %v3548_v56 = vmul.f32 0.5, %v729_v52  ;;  %v3550_v8 = vmul.f32 0.5, %v721_v15 }
 0x112   : > { %v2665_v62 = vpack.c.bf16 %v803_v42, %v802_v17  ;;  %v801_v37 = vmul.f32 %v785_v38, %v3500_v26  ;;  %v790_v7 = vadd.f32 1.0, %v2938_v5  ;;  %2949 = verf.f32 %v763_v46 }
 0x113   : > { %2951 = verf.f32 %v761_v54  ;;  %v925_v58 = vpop.f32.mrf.mxu0  ;;  %v3552_v12 = vadd.bf16 %v1520_v29, %v1485_v47  ;;  %v3554_v35 = vmul.f32 0.5, %v923_v57  ;;  %v931_v26 = vmul.f32 0.70710677, %v923_v57 }
 0x114   : > { %v3544_v9 = vld [vmem:[#allocation2 + $0x38] sm:$0xf]  ;;  %v3546_v50 = vld [vmem:[#allocation2 + $0x3c] sm:$0xf]  ;;  %v2940_v43 = vpop.eup %2939  ;;  %2690 = vst [vmem:[#allocation2 + $0x68] sm:$0xff] %v2665_v62   ;;  %v2660_v44 = vpack.c.bf16 %v801_v37, %v800_v2  ;;  %v926_v13 = vadd.f32 %v3397_v59, %v925_v58  ;;  %v806_v53 = vmul.f32 %v790_v7, %v3502_v27 }
 0x115   : > { %v2942_v17 = vpop.eup %2941  ;;  %v788_v25 = vadd.f32 1.0, %v2940_v43  ;;  %v2816_v52 = vpop.f32.mrf.mxu0  ;;  %v1243_v38 = vmul.bf16 %v3367_v30, %v3544_v9  ;;  %v1244_v47 = vmul.bf16 %v3367_v30, %v3546_v50  ;;  %2953 = verf.f32 %v931_v26  ;;  %v3562_v5 = vld [vmem:[#allocation2 + $0x20] sm:$0xf]  ;;  %v3568_v2 = vld [vmem:[#allocation2 + $0x24] sm:$0xf] }
 0x116   : > { %v1111_v42 = vld [vmem:[#allocation2 + $0x8] sm:$0xf]  ;;  %v1112_v15 = vld [vmem:[#allocation2 + $0xc] sm:$0xf]  ;;  %2689 = vst [vmem:[#allocation2 + $0x50] sm:$0xff] %v2660_v44   ;;  %v791_v29 = vadd.f32 1.0, %v2942_v17  ;;  %v1362_v59 = vmul.bf16 %v3405_v61, %v3544_v9  ;;  %v1187_v55 = vmul.bf16 %v3359_v21, %v3562_v5  ;;  %v1188_v7 = vmul.bf16 %v3359_v21, %v3568_v2 }
 0x117   : > { %v932_v46 = vmul.f32 0.70710677, %v926_v13  ;;  %v3566_v27 = vmul.f32 0.5, %v926_v13  ;;  %v1152_v54 = vmul.bf16 %v3357_v20, %v1111_v42  ;;  %v1153_v57 = vmul.bf16 %v3357_v20, %v1112_v15 }
 0x118   : > { %v2944_v62 = vpop.eup %2943  ;;  %v807_v37 = vmul.f32 %v791_v29, %v3522_v4  ;;  %v1298_v58 = vmul.bf16 %v3403_v60, %v1111_v42  ;;  %v1299_v26 = vmul.bf16 %v3403_v60, %v1112_v15  ;;  %v1322_v13 = vmul.bf16 %v3409_v0, %v3562_v5 }
 0x119   : > { %2955 = verf.f32 %v932_v46  ;;  %v789_v43 = vadd.f32 1.0, %v2944_v62  ;;  %v1211_v44 = vadd.bf16 %v1187_v55, %v1152_v54  ;;  %v2946_v17 = vpop.eup %2945  ;;  %v804_v52 = vmul.f32 %v788_v25, %v3514_v39 }
 0x11a   : > { %v2675_v34 = vpack.c.bf16 %v807_v37, %v806_v53  ;;  %v1212_v31 = vadd.bf16 %v1188_v7, %v1153_v57  ;;  %v1323_v4 = vmul.bf16 %v3409_v0, %v3568_v2  ;;  %v794_v46 = vadd.f32 1.0, %v2946_v17 }
 0x11b   : > { %v805_v29 = vmul.f32 %v789_v43, %v3527_v63  ;;  %v1267_v18 = vadd.bf16 %v1243_v38, %v1211_v44  ;;  %v1338_v62 = vadd.bf16 %v1322_v13, %v1298_v58  ;;  %v1363_v14 = vmul.bf16 %v3405_v61, %v3546_v50 }
 0x11c   : > { %v2948_v54 = vpop.eup %2947  ;;  %2692 = vst [vmem:[#allocation2 + $0x98] sm:$0xff] %v2675_v34   ;;  %v1339_v55 = vadd.bf16 %v1323_v4, %v1299_v26  ;;  %v1412_v1 = vmul.bf16 %v3349_v10, %v1111_v42  ;;  %v1413_v39 = vmul.bf16 %v3349_v10, %v1112_v15  ;;  %v1268_v57 = vadd.bf16 %v1244_v47, %v1212_v31 }
 0x11d   : > { %v2670_v53 = vpack.c.bf16 %v805_v29, %v804_v52  ;;  %v792_v25 = vadd.f32 1.0, %v2948_v54  ;;  %v1378_v37 = vadd.bf16 %v1362_v59, %v1338_v62  ;;  %v810_v7 = vmul.f32 %v794_v46, %v3529_v48 }
 0x11e   : > { %v1379_v63 = vadd.bf16 %v1363_v14, %v1339_v55  ;;  %v1444_v38 = vmul.bf16 %v3351_v11, %v3562_v5  ;;  %v1445_v34 = vmul.bf16 %v3351_v11, %v3568_v2  ;;  %v1503_v15 = vmul.bf16 %v3361_v23, %v3544_v9 }
 0x11f   : > { %v2950_v58 = vpop.eup %2949  ;;  %2691 = vst [vmem:[#allocation2 + $0x80] sm:$0xff] %v2670_v53   ;;  %v808_v42 = vmul.f32 %v792_v25, %v3538_v51  ;;  %v1504_v31 = vmul.bf16 %v3361_v23, %v3546_v50  ;;  %v1552_v48 = vunpack.c.l.bf16 %v1267_v18  ;;  %v1575_v44 = vunpack.c.l.bf16 %v1378_v37 }
 0x120   : > { %v2952_v14 = vpop.eup %2951  ;;  %v795_v47 = vadd.f32 1.0, %v2950_v58  ;;  %v1468_v59 = vadd.bf16 %v1444_v38, %v1412_v1  ;;  %v1469_v43 = vadd.bf16 %v1445_v34, %v1413_v39  ;;  %v1553_v17 = vunpack.c.l.bf16 %v1268_v57  ;;  %v3613_v39 = vld [vmem:[#allocation2 + $0x50] sm:$0xf]  ;;  %v3617_v38 = vld [vmem:[#allocation2 + $0x54] sm:$0xf] }
 0x121   : > { %v793_v26 = vadd.f32 1.0, %v2952_v14  ;;  %v1576_v51 = vunpack.c.l.bf16 %v1379_v63  ;;  %v1155_v52 = vmul.bf16 %v3357_v20, %v3562_v5  ;;  %v1608_v46 = vrot.slane %v1575_v44, 1 }
 0x122   : > { %v811_v4 = vmul.f32 %v795_v47, %v3548_v56  ;;  %v1527_v29 = vadd.bf16 %v1503_v15, %v1468_v59  ;;  %v1528_v18 = vadd.bf16 %v1504_v31, %v1469_v43  ;;  %v2954_v62 = vpop.eup %2953  ;;  %v1156_v22 = vmul.bf16 %v3357_v20, %v3568_v2  ;;  %v3626_v43 = vld [vmem:[%s4136_s6] ss:$0 sm:$0xff] }
 0x123   : > { %v809_v1 = vmul.f32 %v793_v26, %v3550_v8  ;;  %v1609_v54 = vrot.slane %v1576_v51, 1  ;;  %v1190_v55 = vmul.bf16 %v3359_v21, %v3544_v9  ;;  %v935_v25 = vadd.f32 1.0, %v2954_v62 }
 0x124   : > { %v2685_v53 = vpack.c.bf16 %v811_v4, %v810_v7  ;;  %v4149_v57 = vunpack.c.l.bf16 %v3380_v45  ;;  %v1680_v37 = vunpack.c.l.bf16 %v1527_v29  ;;  %v1681_v58 = vunpack.c.l.bf16 %v1528_v18 }
 0x125   : > { %v2680_v34 = vpack.c.bf16 %v809_v1, %v808_v42  ;;  %v1610_v8 = vsel %vm1607_vm8, %v1608_v46, %v1609_v54  ;;  %v1191_v15 = vmul.bf16 %v3359_v21, %v3546_v50  ;;  %v1658_v47 = vadd.f32 %v1609_v54, %v1553_v17 }
 0x126   : > { %v1656_v56 = vadd.f32 %v1608_v46, %v4149_v57  ;;  %v2956_v63 = vpop.eup %2955  ;;  %2694 = vst [vmem:[#allocation2 + $0xc8] sm:$0xff] %v2685_v53   ;;  %v1657_v14 = vadd.f32 %v1610_v8, %v1552_v48  ;;  %v1729_v7 = vrot.slane %v1680_v37, 2  ;;  %v937_v45 = vmul.f32 %v935_v25, %v3554_v35 }
 0x127   : > { %v936_v31 = vadd.f32 1.0, %v2956_v63  ;;  %2693 = vst [vmem:[#allocation2 + $0xb0] sm:$0xff] %v2680_v34   ;;  %v1730_v59 = vrot.slane %v1681_v58, 2  ;;  %v1214_v42 = vadd.bf16 %v1190_v55, %v1155_v52  ;;  %v1246_v44 = vmul.bf16 %v3367_v30, %v3613_v39 }
 0x128   : > { %v1793_v51 = vadd.f32 %v1729_v7, %v1656_v56  ;;  %v1215_v4 = vadd.bf16 %v1191_v15, %v1156_v22  ;;  %v1247_v48 = vmul.bf16 %v3367_v30, %v3617_v38  ;;  %v1300_v29 = vmul.bf16 %v3403_v60, %v3562_v5 }
 0x129   : > { %v938_v26 = vmul.f32 %v936_v31, %v3566_v27  ;;  %v1731_v17 = vsel %vm1728_vm9, %v1729_v7, %v1730_v59  ;;  %v1733_v35 = vsel %vm1728_vm9, %v1730_v59, %v3416_v6  ;;  %v1301_v52 = vmul.bf16 %v3403_v60, %v3568_v2 }
 0x12a   : > { %v1794_v46 = vadd.f32 %v1731_v17, %v1657_v14  ;;  %v1795_v62 = vadd.f32 %v1733_v35, %v1658_v47  ;;  %v1824_v27 = vadd.f32 %v3626_v43, %v1793_v51  ;;  %v1270_v1 = vadd.bf16 %v1246_v44, %v1214_v42  ;;  %v3671_v17 = vld [vmem:[#allocation2 + $0x68] sm:$0xf] }
 0x12b   : > { %v939_v18 = vpack.c.bf16 %v938_v26, %v937_v45  ;;  %v1271_v54 = vadd.bf16 %v1247_v48, %v1215_v4  ;;  %v1324_v22 = vmul.bf16 %v3409_v0, %v3544_v9  ;;  %v1364_v55 = vmul.bf16 %v3405_v61, %v3613_v39 }
 0x12c   : > { %v1825_v53 = vadd.f32 %v3626_v43, %v1794_v46  ;;  %v1826_v25 = vadd.f32 %v3626_v43, %v1795_v62  ;;  %v1325_v57 = vmul.bf16 %v3409_v0, %v3546_v50  ;;  %v1872_v63 = vmul.f32 0.70710677, %v1824_v27 }
 0x12d   : > { %v949_v6 = vsel %vm3601_vm10, 0, %v939_v18  ;;  %v1340_v34 = vadd.bf16 %v1324_v22, %v1300_v29  ;;  %v3651_v8 = vmul.f32 0.5, %v1824_v27  ;;  %v1365_v13 = vmul.bf16 %v3405_v61, %v3617_v38  ;;  %v3675_v18 = vld [vmem:[#allocation2 + $0x6c] sm:$0xf] }
 0x12e   : > { %v2600_v56 = vcombine.low %v949_v6, %v949_v6  ;;  %v2601_v37 = vcombine.high %v949_v6, %v949_v6  ;;  %v3653_v58 = vmul.f32 0.5, %v1825_v53  ;;  %v1341_v15 = vadd.bf16 %v1325_v57, %v1301_v52 }
 0x12f   : > { %v1873_v31 = vmul.f32 0.70710677, %v1825_v53  ;;  %v1874_v14 = vmul.f32 0.70710677, %v1826_v25  ;;  %2957 = verf.f32 %v1872_v63  ;;  %v1380_v47 = vadd.bf16 %v1364_v55, %v1340_v34 }
 0x130   : > { %1040 = vst [vmem:[#allocation2 + $0xe0] sm:$0xf] %v2600_v56  ;;  %1041 = vst [vmem:[#allocation2 + $0xe4] sm:$0xf] %v2601_v37  ;;  %v1381_v7 = vadd.bf16 %v1365_v13, %v1341_v15  ;;  %v1415_v45 = vmul.bf16 %v3349_v10, %v3562_v5  ;;  %v1416_v59 = vmul.bf16 %v3349_v10, %v3568_v2  ;;  %v3669_v4 = vmul.f32 0.5, %v1826_v25 }
 0x131   : > { %v1447_v42 = vmul.bf16 %v3351_v11, %v3544_v9  ;;  %2959 = verf.f32 %v1873_v31  ;;  %v1448_v44 = vmul.bf16 %v3351_v11, %v3546_v50  ;;  %v1506_v26 = vmul.bf16 %v3361_v23, %v3613_v39 }
 0x132   : > { %v1507_v51 = vmul.bf16 %v3361_v23, %v3617_v38  ;;  %2961 = verf.f32 %v1874_v14  ;;  %v1555_v48 = vunpack.c.l.bf16 %v1270_v1  ;;  %v1577_v35 = vunpack.c.l.bf16 %v1380_v47 }
 0x133   : > { %v1471_v5 = vadd.bf16 %v1447_v42, %v1415_v45  ;;  %v1472_v2 = vadd.bf16 %v1448_v44, %v1416_v59  ;;  %v1578_v29 = vunpack.c.l.bf16 %v1381_v7  ;;  %v1158_v52 = vmul.bf16 %v3357_v20, %v3544_v9 }
 0x134   : > { %v1159_v62 = vmul.bf16 %v3357_v20, %v3546_v50  ;;  %v1193_v27 = vmul.bf16 %v3359_v21, %v3613_v39  ;;  %v1194_v1 = vmul.bf16 %v3359_v21, %v3617_v38  ;;  %v1556_v55 = vunpack.c.l.bf16 %v1271_v54 }
 0x135   : > { %v1530_v46 = vadd.bf16 %v1506_v26, %v1471_v5  ;;  %v1531_v22 = vadd.bf16 %v1507_v51, %v1472_v2  ;;  %v1611_v6 = vrot.slane %v1577_v35, 1  ;;  %v1612_v53 = vrot.slane %v1578_v29, 1 }
 0x136   : > { %v1217_v57 = vadd.bf16 %v1193_v27, %v1158_v52  ;;  %v1218_v56 = vadd.bf16 %v1194_v1, %v1159_v62  ;;  %v1249_v37 = vmul.bf16 %v3367_v30, %v3671_v17  ;;  %v4150_v34 = vunpack.c.l.bf16 %v3435_v36 }
 0x137   : > { %v1683_v25 = vunpack.c.l.bf16 %v1530_v46  ;;  %v1613_v63 = vsel %vm1607_vm8, %v1611_v6, %v1612_v53  ;;  %v1684_v13 = vunpack.c.l.bf16 %v1531_v22  ;;  %v1250_v31 = vmul.bf16 %v3367_v30, %v3675_v18 }
 0x138   : > { %v1659_v15 = vadd.f32 %v1611_v6, %v4150_v34  ;;  %v1660_v14 = vadd.f32 %v1613_v63, %v1555_v48  ;;  %v1661_v47 = vadd.f32 %v1612_v53, %v1556_v55  ;;  %v3690_v7 = vadd.bf16 %v1249_v37, %v1217_v57 }
 0x139   : > { %v1734_v54 = vrot.slane %v1683_v25, 2  ;;  %v1735_v45 = vrot.slane %v1684_v13, 2  ;;  %v3692_v59 = vadd.bf16 %v1250_v31, %v1218_v56  ;;  %v1302_v42 = vmul.bf16 %v3403_v60, %v3544_v9 }
 0x13a   : > { %v1326_v44 = vmul.bf16 %v3409_v0, %v3613_v39  ;;  %v1303_v26 = vmul.bf16 %v3403_v60, %v3546_v50  ;;  %v1327_v51 = vmul.bf16 %v3409_v0, %v3617_v38  ;;  %v1366_v5 = vmul.bf16 %v3405_v61, %v3671_v17 }
 0x13b   : > { %v1796_v36 = vadd.f32 %v1734_v54, %v1659_v15  ;;  %v1736_v48 = vsel %vm1728_vm9, %v1734_v54, %v1735_v45  ;;  %v1738_v2 = vsel %vm1728_vm9, %v1735_v45, %v3460_v16  ;;  %v1367_v29 = vmul.bf16 %v3405_v61, %v3675_v18 }
 0x13c   : > { %v1342_v35 = vadd.bf16 %v1326_v44, %v1302_v42  ;;  %v2958_v52 = vpop.eup %2957  ;;  %v1797_v46 = vadd.f32 %v1736_v48, %v1660_v14  ;;  %v1798_v62 = vadd.f32 %v1738_v2, %v1661_v47  ;;  %v1343_v1 = vadd.bf16 %v1327_v51, %v1303_v26 }
 0x13d   : > { %v1827_v27 = vadd.f32 %v3626_v43, %v1796_v36  ;;  %v1920_v22 = vadd.f32 1.0, %v2958_v52  ;;  %v1418_v6 = vmul.bf16 %v3349_v10, %v3544_v9  ;;  %v1450_v53 = vmul.bf16 %v3351_v11, %v3613_v39 }
 0x13e   : > { %v1382_v55 = vadd.bf16 %v1366_v5, %v1342_v35  ;;  %v2960_v25 = vpop.eup %2959  ;;  %v1828_v16 = vadd.f32 %v3626_v43, %v1797_v46  ;;  %v3716_v57 = vadd.f32 %v3626_v43, %v1798_v62  ;;  %v1419_v37 = vmul.bf16 %v3349_v10, %v3546_v50 }
 0x13f   : > { %v1875_v56 = vmul.f32 0.70710677, %v1827_v27  ;;  %v2962_v63 = vpop.eup %2961  ;;  %v1921_v34 = vadd.f32 1.0, %v2960_v25  ;;  %v1944_v15 = vmul.f32 %v1920_v22, %v3651_v8  ;;  %v3721_v13 = vmul.f32 0.5, %v1827_v27 }
 0x140   : > { %v1451_v9 = vmul.bf16 %v3351_v11, %v3617_v38  ;;  %v1922_v31 = vadd.f32 1.0, %v2962_v63  ;;  %v3725_v14 = vmul.f32 0.5, %v1828_v16  ;;  %v1876_v47 = vmul.f32 0.70710677, %v1828_v16 }
 0x141   : > { %v1383_v54 = vadd.bf16 %v1367_v29, %v1343_v1  ;;  %v1945_v45 = vmul.f32 %v1921_v34, %v3653_v58  ;;  %v1877_v42 = vmul.f32 0.70710677, %v3716_v57  ;;  %2963 = verf.f32 %v1875_v56 }
 0x142   : > { %v1474_v50 = vadd.bf16 %v1450_v53, %v1418_v6  ;;  %v1946_v44 = vmul.f32 %v1922_v31, %v3669_v4  ;;  %2965 = verf.f32 %v1876_v47  ;;  %v1475_v8 = vadd.bf16 %v1451_v9, %v1419_v37  ;;  %v3739_v31 = vld [vmem:[#allocation2 + $0x80] sm:$0xf] }
 0x143   : > { %v1509_v36 = vmul.bf16 %v3361_v23, %v3671_v17  ;;  %v1968_v26 = vpack.c.bf16 %v1945_v45, %v1944_v15  ;;  %2967 = verf.f32 %v1877_v42  ;;  %v1510_v51 = vmul.bf16 %v3361_v23, %v3675_v18 }
 0x144   : > { %v1558_v5 = vunpack.c.l.bf16 %v3690_v7  ;;  %v1969_v58 = vpack.c.bf16 %v1946_v44, %v1946_v44  ;;  %v1559_v2 = vunpack.c.l.bf16 %v3692_v59  ;;  %v1579_v35 = vunpack.c.l.bf16 %v1382_v55 }
 0x145   : > { %v1533_v48 = vadd.bf16 %v1509_v36, %v1474_v50  ;;  %v1986_v29 = vshrl.u32 %v1968_v26, 16  ;;  %v1989_v52 = vshll.u32 %v1968_v26, 16  ;;  %v1534_v4 = vadd.bf16 %v1510_v51, %v1475_v8  ;;  %v3743_v50 = vld [vmem:[#allocation2 + $0x84] sm:$0xf] }
 0x146   : > { %v1580_v46 = vunpack.c.l.bf16 %v1383_v54  ;;  %v1994_v62 = vshrl.u32 %v1969_v58, 16  ;;  %v1997_v27 = vshll.u32 %v1969_v58, 16  ;;  %v1614_v1 = vrot.slane %v1579_v35, 1 }
 0x147   : > { %v1686_v22 = vunpack.c.l.bf16 %v1533_v48  ;;  %v1988_v6 = vrot.slane %v1986_v29, 3  ;;  %v1991_v53 = vrot.slane %v1989_v52, 4  ;;  %v1687_v16 = vunpack.c.l.bf16 %v1534_v4 }
 0x148   : > { %v1615_v25 = vrot.slane %v1580_v46, 1  ;;  %v1996_v56 = vrot.slane %v1994_v62, 3  ;;  %v1999_v37 = vrot.slane %v1997_v27, 4  ;;  %v4151_v7 = vunpack.c.l.bf16 %v3438_v41 }
 0x149   : > { %v1739_v34 = vrot.slane %v1686_v22, 2  ;;  %v1992_v59 = vor.u32 %v1991_v53, %v1988_v6  ;;  %v1740_v9 = vrot.slane %v1687_v16, 2  ;;  %v1161_v42 = vmul.bf16 %v3357_v20, %v3613_v39 }
 0x14a   : > { %v1662_v63 = vadd.f32 %v1614_v1, %v4151_v7  ;;  %v1616_v55 = vsel %vm1607_vm8, %v1614_v1, %v1615_v25  ;;  %v1664_v15 = vadd.f32 %v1615_v25, %v1559_v2  ;;  %v2000_v47 = vor.u32 %v1999_v37, %v1996_v56 }
 0x14b   : > { %v1663_v54 = vadd.f32 %v1616_v55, %v1558_v5  ;;  %v1741_v44 = vsel %vm1728_vm9, %v1739_v34, %v1740_v9  ;;  %v1743_v41 = vsel %vm1728_vm9, %v1740_v9, %v3466_v28  ;;  %v1162_v8 = vmul.bf16 %v3357_v20, %v3617_v38 }
 0x14c   : > { %v1799_v45 = vadd.f32 %v1739_v34, %v1662_v63  ;;  %v1196_v36 = vmul.bf16 %v3359_v21, %v3671_v17  ;;  %v2001_v26 = vsel %vm1984_vm11, %v1992_v59, %v2000_v47  ;;  %v1801_v5 = vadd.f32 %v1743_v41, %v1664_v15 }
 0x14d   : > { %v1800_v51 = vadd.f32 %v1741_v44, %v1663_v54  ;;  %2833 = vmatprep.mubr.bf16.mxu1 %v2001_v26  ;;  %v1853_v48 = vmul.f32 0.5, %v3716_v57  ;;  %v1197_v2 = vmul.bf16 %v3359_v21, %v3675_v18  ;;  %v1252_v28 = vmul.bf16 %v3367_v30, %v3739_v31 }
 0x14e   : > { %v1830_v58 = vadd.f32 %v3626_v43, %v1799_v45  ;;  %v1220_v35 = vadd.bf16 %v1196_v36, %v1161_v42  ;;  %v2964_v29 = vpop.eup %2963  ;;  %v1832_v4 = vadd.f32 %v3626_v43, %v1801_v5  ;;  %v1253_v62 = vmul.bf16 %v3367_v30, %v3743_v50 }
 0x14f   : > { %v1831_v52 = vadd.f32 %v3626_v43, %v1800_v51  ;;  %v2966_v27 = vpop.eup %2965  ;;  %v1923_v1 = vadd.f32 1.0, %v2964_v29  ;;  %v1221_v57 = vadd.bf16 %v1197_v2, %v1162_v8  ;;  %v1304_v37 = vmul.bf16 %v3403_v60, %v3613_v39 }
 0x150   : > { %v1878_v46 = vmul.f32 0.70710677, %v1830_v58  ;;  %v3763_v22 = vmul.f32 0.5, %v1830_v58  ;;  %v3765_v6 = vadd.bf16 %v1252_v28, %v1220_v35  ;;  %v2968_v53 = vpop.eup %2967  ;;  %v1924_v25 = vadd.f32 1.0, %v2966_v27 }
 0x151   : > { %v3767_v16 = vmul.f32 0.5, %v1831_v52  ;;  %v1879_v56 = vmul.f32 0.70710677, %v1831_v52  ;;  %v1925_v7 = vadd.f32 1.0, %v2968_v53  ;;  %v1947_v63 = vmul.f32 %v1923_v1, %v3721_v13 }
 0x152   : > { %v1880_v34 = vmul.f32 0.70710677, %v1832_v4  ;;  %2969 = verf.f32 %v1878_v46  ;;  %v1948_v59 = vmul.f32 %v1924_v25, %v3725_v14  ;;  %v1277_v55 = vadd.bf16 %v1253_v62, %v1221_v57 }
 0x153   : > { %2971 = verf.f32 %v1879_v56  ;;  %v1305_v15 = vmul.bf16 %v3403_v60, %v3617_v38  ;;  %v1949_v9 = vmul.f32 %v1925_v7, %v1853_v48  ;;  %v1328_v47 = vmul.bf16 %v3409_v0, %v3671_v17 }
 0x154   : > { %2973 = verf.f32 %v1880_v34  ;;  %v1329_v54 = vmul.bf16 %v3409_v0, %v3675_v18  ;;  %v1970_v45 = vpack.c.bf16 %v1948_v59, %v1947_v63  ;;  %v1368_v13 = vmul.bf16 %v3405_v61, %v3739_v31 }
 0x155   : > { %v1369_v14 = vmul.bf16 %v3405_v61, %v3743_v50  ;;  %v1421_v42 = vmul.bf16 %v3349_v10, %v3613_v39  ;;  %v1971_v44 = vpack.c.bf16 %v1949_v9, %v1949_v9  ;;  %v1344_v41 = vadd.bf16 %v1328_v47, %v1304_v37 }
 0x156   : > { %v1345_v8 = vadd.bf16 %v1329_v54, %v1305_v15  ;;  %v1422_v36 = vmul.bf16 %v3349_v10, %v3617_v38  ;;  %v2003_v26 = vshrl.u32 %v1970_v45, 16  ;;  %v2006_v51 = vshll.u32 %v1970_v45, 16  ;;  %v3800_v54 = vld [vmem:[#allocation2 + $0x98] sm:$0xf] }
 0x157   : > { %v1453_v5 = vmul.bf16 %v3351_v11, %v3671_v17  ;;  %v1454_v58 = vmul.bf16 %v3351_v11, %v3675_v18  ;;  %v2011_v48 = vshrl.u32 %v1971_v44, 16  ;;  %v2014_v2 = vshll.u32 %v1971_v44, 16 }
 0x158   : > { %v1384_v35 = vadd.bf16 %v1368_v13, %v1344_v41  ;;  %v1385_v28 = vadd.bf16 %v1369_v14, %v1345_v8  ;;  %v2005_v29 = vrot.slane %v2003_v26, 3  ;;  %v2008_v39 = vrot.slane %v2006_v51, 4  ;;  %v3809_v26 = vld [vmem:[#allocation2 + $0x9c] sm:$0xf] }
 0x159   : > { %v1477_v52 = vadd.bf16 %v1453_v5, %v1421_v42  ;;  %v1478_v46 = vadd.bf16 %v1454_v58, %v1422_v36  ;;  %v2013_v62 = vrot.slane %v2011_v48, 3  ;;  %v2016_v27 = vrot.slane %v2014_v2, 4 }
 0x15a   : > { %v1512_v38 = vmul.bf16 %v3361_v23, %v3739_v31  ;;  %v1513_v1 = vmul.bf16 %v3361_v23, %v3743_v50  ;;  %v2009_v57 = vor.u32 %v2008_v39, %v2005_v29  ;;  %v1856_v53 = vmul.f32 0.5, %v1832_v4 }
 0x15b   : > { %v1561_v25 = vunpack.c.l.bf16 %v3765_v6  ;;  %v1581_v56 = vunpack.c.l.bf16 %v1384_v35  ;;  %v2017_v37 = vor.u32 %v2016_v27, %v2013_v62  ;;  %v1582_v34 = vunpack.c.l.bf16 %v1385_v28 }
 0x15c   : > { %v1536_v7 = vadd.bf16 %v1512_v38, %v1477_v52  ;;  %v1537_v63 = vadd.bf16 %v1513_v1, %v1478_v46  ;;  %v1562_v59 = vunpack.c.l.bf16 %v1277_v55  ;;  %v1164_v9 = vmul.bf16 %v3357_v20, %v3671_v17 }
 0x15d   : > { %v1617_v15 = vrot.slane %v1581_v56, 1  ;;  %v1199_v47 = vmul.bf16 %v3359_v21, %v3739_v31  ;;  %v2018_v45 = vsel %vm1984_vm11, %v2009_v57, %v2017_v37  ;;  %v1618_v4 = vrot.slane %v1582_v34, 1 }
 0x15e   : > { %v1689_v13 = vunpack.c.l.bf16 %v1536_v7  ;;  %v1690_v6 = vunpack.c.l.bf16 %v1537_v63  ;;  %2834 = vmatmul.mubr.bf16.vlgmr.msra.gmra.mxu1 %v2018_v45  ;;  %v4152_v42 = vunpack.c.l.bf16 %v3443_v49  ;;  %v1165_v55 = vmul.bf16 %v3357_v20, %v3675_v18 }
 0x15f   : > { %v2970_v14 = vpop.eup %2969  ;;  %v1200_v41 = vmul.bf16 %v3359_v21, %v3743_v50  ;;  %v1223_v8 = vadd.bf16 %v1199_v47, %v1164_v9  ;;  %v1619_v5 = vsel %vm1607_vm8, %v1617_v15, %v1618_v4  ;;  %v1667_v58 = vadd.f32 %v1618_v4, %v1562_v59  ;;  %v3825_v59 = vld [vmem:[#allocation2 + $0x94] sm:$0x8] }
 0x160   : > { %v1665_v44 = vadd.f32 %v1617_v15, %v4152_v42  ;;  %v2972_v36 = vpop.eup %2971  ;;  %v1926_v51 = vadd.f32 1.0, %v2970_v14  ;;  %v1744_v48 = vrot.slane %v1689_v13, 2  ;;  %v1666_v28 = vadd.f32 %v1619_v5, %v1561_v25 }
 0x161   : > { %v2974_v2 = vpop.eup %2973  ;;  %v1927_v35 = vadd.f32 1.0, %v2972_v36  ;;  %v1745_v49 = vrot.slane %v1690_v6, 2  ;;  %v1255_v29 = vmul.bf16 %v3367_v30, %v3800_v54  ;;  %v1224_v62 = vadd.bf16 %v1200_v41, %v1165_v55 }
 0x162   : > { %v1928_v39 = vadd.f32 1.0, %v2974_v2  ;;  %v1950_v52 = vmul.f32 %v1926_v51, %v3763_v22  ;;  %v1802_v46 = vadd.f32 %v1744_v48, %v1665_v44  ;;  %v1256_v57 = vmul.bf16 %v3367_v30, %v3809_v26 }
 0x163   : > { %v1951_v27 = vmul.f32 %v1927_v35, %v3767_v16  ;;  %v1746_v38 = vsel %vm1728_vm9, %v1744_v48, %v1745_v49  ;;  %v1748_v1 = vsel %vm1728_vm9, %v1745_v49, %v3469_v32  ;;  %v3822_v34 = vadd.bf16 %v1255_v29, %v1223_v8 }
 0x164   : > { %v1952_v25 = vmul.f32 %v1928_v39, %v1856_v53  ;;  %v1803_v56 = vadd.f32 %v1746_v38, %v1666_v28  ;;  %v1804_v37 = vadd.f32 %v1748_v1, %v1667_v58  ;;  %v1833_v7 = vadd.f32 %v3626_v43, %v1802_v46 }
 0x165   : > { %v1972_v63 = vpack.c.bf16 %v1951_v27, %v1950_v52  ;;  %v1697_v22 = vunpack.c.l.bf16 %v3552_v12  ;;  %v1169_v16 = vmul.bf16 %v3825_v59, %v3357_v20  ;;  %v1280_v53 = vadd.bf16 %v1256_v57, %v1224_v62 }
 0x166   : > { %v1973_v15 = vpack.c.bf16 %v1952_v25, %v1952_v25  ;;  %v1834_v32 = vadd.f32 %v3626_v43, %v1803_v56  ;;  %v1835_v9 = vadd.f32 %v3626_v43, %v1804_v37  ;;  %v1881_v4 = vmul.f32 0.70710677, %v1833_v7 }
 0x167   : > { %v2020_v47 = vshrl.u32 %v1972_v63, 16  ;;  %v2023_v45 = vshll.u32 %v1972_v63, 16  ;;  %v1330_v13 = vmul.bf16 %v3409_v0, %v3739_v31  ;;  %v1306_v42 = vmul.bf16 %v3403_v60, %v3671_v17 }
 0x168   : > { %v2028_v6 = vshrl.u32 %v1973_v15, 16  ;;  %v2031_v14 = vshll.u32 %v1973_v15, 16  ;;  %v1307_v44 = vmul.bf16 %v3403_v60, %v3675_v18  ;;  %v1882_v8 = vmul.f32 0.70710677, %v1834_v32 }
 0x169   : > { %v2022_v55 = vrot.slane %v2020_v47, 3  ;;  %v2025_v41 = vrot.slane %v2023_v45, 4  ;;  %v1883_v36 = vmul.f32 0.70710677, %v1835_v9  ;;  %2975 = verf.f32 %v1881_v4 }
 0x16a   : > { %v2030_v51 = vrot.slane %v2028_v6, 3  ;;  %v2033_v5 = vrot.slane %v2031_v14, 4  ;;  %v1331_v58 = vmul.bf16 %v3409_v0, %v3743_v50  ;;  %2977 = verf.f32 %v1882_v8 }
 0x16b   : > { %v2026_v48 = vor.u32 %v2025_v41, %v2022_v55  ;;  %v1346_v2 = vadd.bf16 %v1330_v13, %v1306_v42  ;;  %v1370_v35 = vmul.bf16 %v3405_v61, %v3800_v54  ;;  %2979 = verf.f32 %v1883_v36  ;;  %v3865_v55 = vld [vmem:[#allocation2 + $0xb4] sm:$0xf] }
 0x16c   : > { %v2034_v28 = vor.u32 %v2033_v5, %v2030_v51  ;;  %v1347_v49 = vadd.bf16 %v1331_v58, %v1307_v44  ;;  %v1371_v29 = vmul.bf16 %v3405_v61, %v3809_v26  ;;  %v1857_v39 = vmul.f32 0.5, %v1833_v7  ;;  %v3856_v7 = vld [vmem:[#allocation2 + $0xb0] sm:$0xf] }
 0x16d   : > { %v1386_v52 = vadd.bf16 %v1370_v35, %v1346_v2  ;;  %v1424_v46 = vmul.bf16 %v3349_v10, %v3671_v17  ;;  %v1456_v62 = vmul.bf16 %v3351_v11, %v3739_v31  ;;  %v1425_v1 = vmul.bf16 %v3349_v10, %v3675_v18 }
 0x16e   : > { %v2035_v27 = vsel %vm1984_vm11, %v2026_v48, %v2034_v28  ;;  %v1387_v38 = vadd.bf16 %v1371_v29, %v1347_v49  ;;  %v1457_v57 = vmul.bf16 %v3351_v11, %v3743_v50  ;;  %v1858_v25 = vmul.f32 0.5, %v1834_v32 }
 0x16f   : > { %2837 = vmatprep.mubr.bf16.mxu1 %v2035_v27  ;;  %v1480_v56 = vadd.bf16 %v1456_v62, %v1424_v46  ;;  %v1515_v37 = vmul.bf16 %v3361_v23, %v3800_v54  ;;  %v1516_v17 = vmul.bf16 %v3361_v23, %v3809_v26  ;;  %v1583_v15 = vunpack.c.l.bf16 %v1386_v52 }
 0x170   : > { %v1481_v63 = vadd.bf16 %v1457_v57, %v1425_v1  ;;  %v1584_v47 = vunpack.c.l.bf16 %v1387_v38  ;;  %v1167_v18 = vmul.bf16 %v3357_v20, %v3739_v31  ;;  %v1859_v45 = vmul.f32 0.5, %v1835_v9 }
 0x171   : > { %v1539_v4 = vadd.bf16 %v1515_v37, %v1480_v56  ;;  %v1564_v13 = vunpack.c.l.bf16 %v3822_v34  ;;  %v1168_v32 = vmul.bf16 %v3357_v20, %v3743_v50  ;;  %v1620_v14 = vrot.slane %v1583_v15, 1 }
 0x172   : > { %v1540_v6 = vadd.bf16 %v1516_v17, %v1481_v63  ;;  %v1621_v42 = vrot.slane %v1584_v47, 1  ;;  %v1202_v44 = vmul.bf16 %v3359_v21, %v3800_v54  ;;  %v1565_v41 = vunpack.c.l.bf16 %v1280_v53 }
 0x173   : > { %v1692_v8 = vunpack.c.l.bf16 %v1539_v4  ;;  %v1203_v36 = vmul.bf16 %v3359_v21, %v3809_v26  ;;  %v1258_v9 = vmul.bf16 %v3367_v30, %v3856_v7  ;;  %v4153_v51 = vunpack.c.l.bf16 %v3471_v33 }
 0x174   : > { %v1622_v34 = vsel %vm1607_vm8, %v1620_v14, %v1621_v42  ;;  %v1693_v58 = vunpack.c.l.bf16 %v1540_v6  ;;  %v1226_v48 = vadd.bf16 %v1202_v44, %v1167_v18  ;;  %v1670_v35 = vadd.f32 %v1621_v42, %v1565_v41 }
 0x175   : > { %v1668_v5 = vadd.f32 %v1620_v14, %v4153_v51  ;;  %v1669_v2 = vadd.f32 %v1622_v34, %v1564_v13  ;;  %v1749_v28 = vrot.slane %v1692_v8, 2  ;;  %v1227_v49 = vadd.bf16 %v1203_v36, %v1168_v32 }
 0x176   : > { %v1750_v29 = vrot.slane %v1693_v58, 2  ;;  %v1259_v53 = vmul.bf16 %v3367_v30, %v3865_v55  ;;  %v1308_v52 = vmul.bf16 %v3403_v60, %v3739_v31  ;;  %v1309_v46 = vmul.bf16 %v3403_v60, %v3743_v50  ;;  %v2976_v62 = vpop.eup %2975 }
 0x177   : > { %v1805_v27 = vadd.f32 %v1749_v28, %v1668_v5  ;;  %v1332_v33 = vmul.bf16 %v3409_v0, %v3800_v54  ;;  %v1333_v38 = vmul.bf16 %v3409_v0, %v3809_v26  ;;  %v1372_v1 = vmul.bf16 %v3405_v61, %v3856_v7  ;;  %v2978_v57 = vpop.eup %2977 }
 0x178   : > { %v1929_v56 = vadd.f32 1.0, %v2976_v62  ;;  %v1751_v37 = vsel %vm1728_vm9, %v1749_v28, %v1750_v29  ;;  %v1753_v17 = vsel %vm1728_vm9, %v1750_v29, %v3505_v40  ;;  %v1373_v63 = vmul.bf16 %v3405_v61, %v3865_v55  ;;  %v2980_v15 = vpop.eup %2979 }
 0x179   : > { %v1930_v47 = vadd.f32 1.0, %v2978_v57  ;;  %v1806_v18 = vadd.f32 %v1751_v37, %v1669_v2  ;;  %v1807_v4 = vadd.f32 %v1753_v17, %v1670_v35  ;;  %v1836_v13 = vadd.f32 %v3626_v43, %v1805_v27 }
 0x17a   : > { %v1931_v32 = vadd.f32 1.0, %v2980_v15  ;;  %v1953_v6 = vmul.f32 %v1929_v56, %v1857_v39  ;;  %v1282_v14 = vadd.bf16 %v1258_v9, %v1226_v48  ;;  %v1348_v42 = vadd.bf16 %v1332_v33, %v1308_v52 }
 0x17b   : > { %v1954_v44 = vmul.f32 %v1930_v47, %v1858_v25  ;;  %v1837_v41 = vadd.f32 %v3626_v43, %v1806_v18  ;;  %v3894_v8 = vadd.f32 %v3626_v43, %v1807_v4  ;;  %v1349_v40 = vadd.bf16 %v1333_v38, %v1309_v46 }
 0x17c   : > { %v1955_v36 = vmul.f32 %v1931_v32, %v1859_v45  ;;  %v1884_v34 = vmul.f32 0.70710677, %v1836_v13  ;;  %v1283_v51 = vadd.bf16 %v1259_v53, %v1227_v49  ;;  %v1388_v5 = vadd.bf16 %v1372_v1, %v1348_v42 }
 0x17d   : > { %v1974_v58 = vpack.c.bf16 %v1954_v44, %v1953_v6  ;;  %v1885_v2 = vmul.f32 0.70710677, %v1837_v41  ;;  %v1389_v35 = vadd.bf16 %v1373_v63, %v1349_v40  ;;  %v1427_v28 = vmul.bf16 %v3349_v10, %v3739_v31 }
 0x17e   : > { %v1975_v39 = vpack.c.bf16 %v1955_v36, %v1955_v36  ;;  %v1886_v9 = vmul.f32 0.70710677, %v3894_v8  ;;  %2981 = verf.f32 %v1884_v34  ;;  %v1428_v25 = vmul.bf16 %v3349_v10, %v3743_v50 }
 0x17f   : > { %v2037_v48 = vshrl.u32 %v1974_v58, 16  ;;  %v2040_v29 = vshll.u32 %v1974_v58, 16  ;;  %2983 = verf.f32 %v1885_v2  ;;  %v1459_v45 = vmul.bf16 %v3351_v11, %v3800_v54 }
 0x180   : > { %v2045_v49 = vshrl.u32 %v1975_v39, 16  ;;  %v2048_v53 = vshll.u32 %v1975_v39, 16  ;;  %2985 = verf.f32 %v1886_v9  ;;  %v1460_v52 = vmul.bf16 %v3351_v11, %v3809_v26  ;;  %v3925_v9 = vld [vmem:[#allocation2 + $0xc8] sm:$0xf] }
 0x181   : > { %v2039_v31 = vrot.slane %v2037_v48, 3  ;;  %v2042_v46 = vrot.slane %v2040_v29, 4  ;;  %v1483_v62 = vadd.bf16 %v1459_v45, %v1427_v28  ;;  %v1518_v27 = vmul.bf16 %v3361_v23, %v3856_v7 }
 0x182   : > { %v2047_v33 = vrot.slane %v2045_v49, 3  ;;  %v2050_v50 = vrot.slane %v2048_v53, 4  ;;  %v1484_v38 = vadd.bf16 %v1460_v52, %v1428_v25  ;;  %v1519_v1 = vmul.bf16 %v3361_v23, %v3865_v55  ;;  %v3936_v53 = vld [vmem:[#allocation2 + $0xcc] sm:$0xf] }
 0x183   : > { %v2043_v57 = vor.u32 %v2042_v46, %v2039_v31  ;;  %v1860_v56 = vmul.f32 0.5, %v1836_v13  ;;  %v1861_v37 = vmul.f32 0.5, %v1837_v41  ;;  %v1542_v17 = vadd.bf16 %v1518_v27, %v1483_v62  ;;  %v3912_v13 = vld [vmem:[#allocation2 + $0xc4] sm:$0x8]  ;;  %v3914_v41 = vld [vmem:[#allocation2 + $0xac] sm:$0x8] }
 0x184   : > { %v2051_v63 = vor.u32 %v2050_v50, %v2047_v33  ;;  %v1543_v15 = vadd.bf16 %v1519_v1, %v1484_v38  ;;  %v1585_v47 = vunpack.c.l.bf16 %v1388_v5  ;;  %v1586_v18 = vunpack.c.l.bf16 %v1389_v35 }
 0x185   : > { %v1567_v4 = vunpack.c.l.bf16 %v1282_v14  ;;  %v1568_v32 = vunpack.c.l.bf16 %v1283_v51  ;;  %v1695_v6 = vunpack.c.l.bf16 %v1542_v17  ;;  %v1757_v42 = vrot.slane %v1697_v22, 2 }
 0x186   : > { %v2052_v44 = vsel %vm1984_vm11, %v2043_v57, %v2051_v63  ;;  %v1623_v40 = vrot.slane %v1585_v47, 1  ;;  %v1624_v36 = vrot.slane %v1586_v18, 1  ;;  %v1696_v34 = vunpack.c.l.bf16 %v1543_v15 }
 0x187   : > { %2838 = vmatmul.mubr.bf16.gmra.mxu1 %v2052_v44  ;;  %v1754_v58 = vrot.slane %v1695_v6, 2  ;;  %v1204_v5 = vmul.bf16 %v3914_v41, %v3359_v21  ;;  %v1205_v14 = vmul.bf16 %v3359_v21, %v3856_v7  ;;  %v1206_v12 = vmul.bf16 %v3359_v21, %v3865_v55 }
 0x188   : > { %v1625_v22 = vsel %vm1607_vm8, %v1623_v40, %v1624_v36  ;;  %v4154_v51 = vunpack.c.l.bf16 %v3508_v3  ;;  %v1673_v35 = vadd.f32 %v1624_v36, %v1568_v32  ;;  %v1755_v28 = vrot.slane %v1696_v34, 2 }
 0x189   : > { %v1672_v39 = vadd.f32 %v1625_v22, %v1567_v4  ;;  %v1170_v25 = vmul.bf16 %v3357_v20, %v3800_v54  ;;  %v1171_v48 = vmul.bf16 %v3357_v20, %v3809_v26  ;;  %v1228_v29 = vadd.bf16 %v1204_v5, %v1169_v16 }
 0x18a   : > { %v1671_v2 = vadd.f32 %v1623_v40, %v4154_v51  ;;  %v1756_v45 = vsel %vm1728_vm9, %v1754_v58, %v1755_v28  ;;  %v1758_v3 = vsel %vm1728_vm9, %v1755_v28, %v1757_v42  ;;  %v1260_v52 = vmul.bf16 %v3367_v30, %v3912_v13 }
 0x18b   : > { %v2982_v31 = vpop.eup %2981  ;;  %v1862_v46 = vmul.f32 0.5, %v3894_v8  ;;  %v1809_v62 = vadd.f32 %v1756_v45, %v1672_v39  ;;  %v1810_v27 = vadd.f32 %v1758_v3, %v1673_v35  ;;  %v1229_v33 = vadd.bf16 %v1205_v14, %v1170_v25 }
 0x18c   : > { %v1808_v49 = vadd.f32 %v1754_v58, %v1671_v2  ;;  %v2984_v50 = vpop.eup %2983  ;;  %v1932_v38 = vadd.f32 1.0, %v2982_v31  ;;  %v1230_v16 = vadd.bf16 %v1206_v12, %v1171_v48  ;;  %v1261_v1 = vmul.bf16 %v3367_v30, %v3925_v9 }
 0x18d   : > { %v2986_v57 = vpop.eup %2985  ;;  %v1933_v17 = vadd.f32 1.0, %v2984_v50  ;;  %v1840_v63 = vadd.f32 %v3626_v43, %v1809_v62  ;;  %v3946_v15 = vadd.f32 %v3626_v43, %v1810_v27  ;;  %v1262_v8 = vmul.bf16 %v3367_v30, %v3936_v53  ;;  %v3039_v27 = vld [vmem:[#allocation2 + $0xa0] sm:$0x1] }
 0x18e   : > { %v1839_v59 = vadd.f32 %v3626_v43, %v1808_v49  ;;  %v1934_v47 = vadd.f32 1.0, %v2986_v57  ;;  %v1956_v18 = vmul.f32 %v1932_v38, %v1860_v56  ;;  %v3950_v32 = vadd.bf16 %v1260_v52, %v1228_v29  ;;  %v3971_v49 = vld [vmem:[#allocation2 + $0xd0] sm:$0x1] }
 0x18f   : > { %v1957_v6 = vmul.f32 %v1933_v17, %v1861_v37  ;;  %v1888_v42 = vmul.f32 0.70710677, %v1840_v63  ;;  %v3952_v44 = vadd.bf16 %v1261_v1, %v1229_v33  ;;  %v1310_v40 = vmul.bf16 %v3403_v60, %v3800_v54 }
 0x190   : > { %v1887_v4 = vmul.f32 0.70710677, %v1839_v59  ;;  %v1958_v36 = vmul.f32 %v1934_v47, %v1862_v46  ;;  %v3956_v34 = vmul.f32 0.5, %v1839_v59  ;;  %v1889_v43 = vmul.f32 0.70710677, %v3946_v15 }
 0x191   : > { %v1976_v58 = vpack.c.bf16 %v1957_v6, %v1956_v18  ;;  %v1311_v56 = vmul.bf16 %v3403_v60, %v3809_v26  ;;  %v1334_v37 = vmul.bf16 %v3409_v0, %v3856_v7  ;;  %v1335_v14 = vmul.bf16 %v3409_v0, %v3865_v55  ;;  %v3980_v59 = vld [vmem:[#allocation2 + $0xb8] sm:$0x1] }
 0x192   : > { %2987 = verf.f32 %v1887_v4  ;;  %v1977_v5 = vpack.c.bf16 %v1958_v36, %v1958_v36  ;;  %v1374_v12 = vmul.bf16 %v3405_v61, %v3925_v9  ;;  %v1375_v35 = vmul.bf16 %v3405_v61, %v3936_v53  ;;  %v1105_v36 = vld [vmem:[#allocation2 + $0xe8] sm:$0x1] }
 0x193   : > { %2989 = verf.f32 %v1888_v42  ;;  %v2054_v22 = vshrl.u32 %v1976_v58, 16  ;;  %v2057_v51 = vshll.u32 %v1976_v58, 16  ;;  %v1350_v2 = vadd.bf16 %v1334_v37, %v1310_v40  ;;  %v1072_v40 = vld [vmem:[#allocation2 + $0xdc] sm:$0x8] }
 0x194   : > { %2991 = verf.f32 %v1889_v43  ;;  %v2062_v28 = vshrl.u32 %v1977_v5, 16  ;;  %v2065_v39 = vshll.u32 %v1977_v5, 16  ;;  %v1351_v25 = vadd.bf16 %v1335_v14, %v1311_v56 }
 0x195   : > { %v1430_v48 = vmul.bf16 %v3349_v10, %v3800_v54  ;;  %v2056_v29 = vrot.slane %v2054_v22, 3  ;;  %v2059_v45 = vrot.slane %v2057_v51, 4  ;;  %v1390_v3 = vadd.bf16 %v1374_v12, %v1350_v2 }
 0x196   : > { %v1431_v52 = vmul.bf16 %v3349_v10, %v3809_v26  ;;  %v2064_v31 = vrot.slane %v2062_v28, 3  ;;  %v2067_v46 = vrot.slane %v2065_v39, 4  ;;  %v1391_v62 = vadd.bf16 %v1375_v35, %v1351_v25 }
 0x197   : > { %v1432_v33 = vmul.bf16 %v3039_v27, %v3349_v10  ;;  %v2060_v50 = vor.u32 %v2059_v45, %v2056_v29  ;;  %v1462_v38 = vmul.bf16 %v3351_v11, %v3856_v7  ;;  %v1463_v54 = vmul.bf16 %v3351_v11, %v3865_v55 }
 0x198   : > { %v1464_v1 = vmul.bf16 %v3980_v59, %v3351_v11  ;;  %v2068_v57 = vor.u32 %v2067_v46, %v2064_v31  ;;  %v1286_v26 = vadd.bf16 %v1262_v8, %v1230_v16  ;;  %v1521_v17 = vmul.bf16 %v3361_v23, %v3925_v9 }
 0x199   : > { %v1523_v47 = vmul.bf16 %v3361_v23, %v3971_v49  ;;  %v1486_v18 = vadd.bf16 %v1462_v38, %v1430_v48  ;;  %v1487_v4 = vadd.bf16 %v1463_v54, %v1431_v52  ;;  %v1522_v42 = vmul.bf16 %v3361_v23, %v3936_v53 }
 0x19a   : > { %v1488_v6 = vadd.bf16 %v1464_v1, %v1432_v33  ;;  %v2069_v43 = vsel %vm1984_vm11, %v2060_v50, %v2068_v57  ;;  %v1864_v58 = vmul.f32 0.5, %v1840_v63  ;;  %v1569_v56 = vunpack.c.l.bf16 %v3950_v32 }
 0x19b   : > { %v1587_v16 = vunpack.c.l.bf16 %v1390_v3  ;;  %2841 = vmatprep.mubr.bf16.mxu1 %v2069_v43  ;;  %v1545_v8 = vadd.bf16 %v1521_v17, %v1486_v18  ;;  %v1546_v37 = vadd.bf16 %v1522_v42, %v1487_v4  ;;  %v1588_v14 = vunpack.c.l.bf16 %v1391_v62 }
 0x19c   : > { %v1547_v5 = vadd.bf16 %v1523_v47, %v1488_v6  ;;  %v1571_v12 = vunpack.c.l.bf16 %v1286_v26  ;;  %v1073_v51 = vsel %vm3293_vm6, 0, %v1072_v40  ;;  %v1106_v2 = vsel %vm3285_vm3, 0, %v1105_v36 }
 0x19d   : > { %v1626_v22 = vrot.slane %v1587_v16, 1  ;;  %v1627_v28 = vrot.slane %v1588_v14, 1  ;;  %v1698_v39 = vunpack.c.l.bf16 %v1545_v8  ;;  %v1699_v63 = vunpack.c.l.bf16 %v1546_v37  ;;  %1074 = vst [vmem:[#allocation2 + $0xdc] sm:$0x8] %v1073_v51  ;;  %1107 = vst [vmem:[#allocation2 + $0xe8] sm:$0x1] %v1106_v2 }
 0x19e   : > { %v1700_v25 = vunpack.c.l.bf16 %v1547_v5  ;;  %v1865_v48 = vmul.f32 0.5, %v3946_v15  ;;  %v1570_v45 = vunpack.c.l.bf16 %v3952_v44  ;;  %v1172_v44 = vmul.bf16 %v3914_v41, %v3357_v20 }
 0x19f   : > { %v2988_v35 = vpop.eup %2987  ;;  %v1674_v3 = vadd.f32 %v1626_v22, %v1569_v56  ;;  %v1628_v31 = vsel %vm1607_vm8, %v1626_v22, %v1627_v28  ;;  %v1676_v19 = vadd.f32 %v1627_v28, %v1571_v12  ;;  %v1759_v46 = vrot.slane %v1698_v39, 2  ;;  %v1138_v28 = vld [vmem:[#allocation2 + $0xe0] sm:$0xf] }
 0x1a0   : > { %v2990_v32 = vpop.eup %2989  ;;  %v1935_v29 = vadd.f32 1.0, %v2988_v35  ;;  %v1675_v33 = vadd.f32 %v1628_v31, %v1570_v45  ;;  %v1760_v50 = vrot.slane %v1699_v63, 2  ;;  %v1762_v54 = vrot.slane %v1700_v25, 2  ;;  %v1139_v25 = vld [vmem:[#allocation2 + $0xe4] sm:$0xf] }
 0x1a1   : > { %v2992_v52 = vpop.eup %2991  ;;  %v1936_v24 = vadd.f32 1.0, %v2990_v32  ;;  %v1811_v1 = vadd.f32 %v1759_v46, %v1674_v3  ;;  %v1173_v26 = vmul.bf16 %v3357_v20, %v3856_v7  ;;  %v1174_v41 = vmul.bf16 %v3357_v20, %v3865_v55 }
 0x1a2   : > { %v1937_v62 = vadd.f32 1.0, %v2992_v52  ;;  %v1959_v27 = vmul.f32 %v1935_v29, %v3956_v34  ;;  %v1761_v15 = vsel %vm1728_vm9, %v1759_v46, %v1760_v50  ;;  %v1763_v47 = vsel %vm1728_vm9, %v1760_v50, %v1762_v54  ;;  %v4009_v34 = vld [vmem:[%s4136_s6] ss:$0 sm:$0xff] }
 0x1a3   : > { %v1960_v38 = vmul.f32 %v1936_v24, %v1864_v58  ;;  %v1812_v18 = vadd.f32 %v1761_v15, %v1675_v33  ;;  %v4012_v4 = vadd.f32 %v4009_v34, %v1811_v1  ;;  %v1813_v42 = vadd.f32 %v1763_v47, %v1676_v19 }
 0x1a4   : > { %v1961_v57 = vmul.f32 %v1937_v62, %v1865_v48  ;;  %v1207_v40 = vmul.bf16 %v3359_v21, %v3912_v13  ;;  %v1208_v56 = vmul.bf16 %v3359_v21, %v3925_v9  ;;  %v1137_v14 = vld [vmem:[#allocation2 + $0xdc] sm:$0x8]  ;;  %v1209_v22 = vmul.bf16 %v3359_v21, %v3936_v53  ;;  %v1403_v50 = vld [vmem:[#allocation2 + $0xe8] sm:$0x1] }
 0x1a5   : > { %v1978_v17 = vpack.c.bf16 %v1960_v38, %v1959_v27  ;;  %v4019_v58 = vadd.f32 %v4009_v34, %v1812_v18  ;;  %v4024_v37 = vadd.f32 %v4009_v34, %v1813_v42  ;;  %v1890_v5 = vmul.f32 0.70710677, %v4012_v4 }
 0x1a6   : > { %v1979_v6 = vpack.c.bf16 %v1961_v57, %v1961_v57  ;;  %v1231_v39 = vadd.bf16 %v1207_v40, %v1172_v44  ;;  %v1263_v32 = vmul.bf16 %v3367_v30, %v1137_v14  ;;  %v1232_v29 = vadd.bf16 %v1208_v56, %v1173_v26 }
 0x1a7   : > { %v2071_v36 = vshrl.u32 %v1978_v17, 16  ;;  %v2074_v43 = vshll.u32 %v1978_v17, 16  ;;  %v1891_v13 = vmul.f32 0.70710677, %v4019_v58  ;;  %v1892_v35 = vmul.f32 0.70710677, %v4024_v37 }
 0x1a8   : > { %v2079_v16 = vshrl.u32 %v1979_v6, 16  ;;  %v2082_v8 = vshll.u32 %v1979_v6, 16  ;;  %2993 = verf.f32 %v1890_v5  ;;  %v1233_v45 = vadd.bf16 %v1209_v22, %v1174_v41 }
 0x1a9   : > { %v2073_v20 = vrot.slane %v2071_v36, 3  ;;  %v2076_v12 = vrot.slane %v2074_v43, 4  ;;  %2995 = verf.f32 %v1891_v13  ;;  %v1264_v3 = vmul.bf16 %v3367_v30, %v1138_v28 }
 0x1aa   : > { %v2081_v51 = vrot.slane %v2079_v16, 3  ;;  %v2084_v2 = vrot.slane %v2082_v8, 4  ;;  %2997 = verf.f32 %v1892_v35  ;;  %v1312_v21 = vmul.bf16 %v3403_v60, %v3856_v7 }
 0x1ab   : > { %v2077_v63 = vor.u32 %v2076_v12, %v2073_v20  ;;  %v1313_v52 = vmul.bf16 %v3403_v60, %v3865_v55  ;;  %v1265_v31 = vmul.bf16 %v3367_v30, %v1139_v25  ;;  %v1287_v19 = vadd.bf16 %v1263_v32, %v1231_v39 }
 0x1ac   : > { %v2085_v48 = vor.u32 %v2084_v2, %v2081_v51  ;;  %v1336_v46 = vmul.bf16 %v3409_v0, %v3925_v9  ;;  %v1337_v62 = vmul.bf16 %v3409_v0, %v3936_v53  ;;  %v1376_v27 = vmul.bf16 %v3405_v61, %v1138_v28 }
 0x1ad   : > { %v1377_v33 = vmul.bf16 %v3405_v61, %v1139_v25  ;;  %v1433_v60 = vmul.bf16 %v3349_v10, %v3856_v7  ;;  %v1434_v30 = vmul.bf16 %v3349_v10, %v3865_v55  ;;  %v1435_v54 = vmul.bf16 %v3980_v59, %v3349_v10 }
 0x1ae   : > { %v2086_v24 = vsel %vm1984_vm11, %v2077_v63, %v2085_v48  ;;  %v1352_v38 = vadd.bf16 %v1336_v46, %v1312_v21  ;;  %v1465_v1 = vmul.bf16 %v3351_v11, %v3925_v9  ;;  %v1353_v57 = vadd.bf16 %v1337_v62, %v1313_v52 }
 0x1af   : > { %2842 = vmatmul.mubr.bf16.gmra.mxu1 %v2086_v24  ;;  %v1466_v0 = vmul.bf16 %v3351_v11, %v3936_v53  ;;  %v1467_v61 = vmul.bf16 %v3351_v11, %v3971_v49  ;;  %v1524_v15 = vmul.bf16 %v3361_v23, %v1138_v28  ;;  %v1525_v26 = vmul.bf16 %v3361_v23, %v1139_v25 }
 0x1b0   : > { %v1392_v7 = vadd.bf16 %v1376_v27, %v1352_v38  ;;  %v1489_v44 = vadd.bf16 %v1465_v1, %v1433_v60  ;;  %v1526_v55 = vmul.bf16 %v3361_v23, %v1403_v50  ;;  %v1289_v17 = vadd.bf16 %v1265_v31, %v1233_v45 }
 0x1b1   : > { %v1393_v10 = vadd.bf16 %v1377_v33, %v1353_v57  ;;  %v1490_v59 = vadd.bf16 %v1466_v0, %v1434_v30  ;;  %v1491_v47 = vadd.bf16 %v1467_v61, %v1435_v54  ;;  %v1288_v9 = vadd.bf16 %v1264_v3, %v1232_v29 }
 0x1b2   : > { %v1548_v18 = vadd.bf16 %v1524_v15, %v1489_v44  ;;  %v1572_v6 = vunpack.c.l.bf16 %v1287_v19  ;;  %v1589_v42 = vunpack.c.l.bf16 %v1392_v7  ;;  %v1866_v11 = vmul.f32 0.5, %v4012_v4 }
 0x1b3   : > { %v1549_v53 = vadd.bf16 %v1525_v26, %v1490_v59  ;;  %v1550_v41 = vadd.bf16 %v1526_v55, %v1491_v47  ;;  %v1590_v40 = vunpack.c.l.bf16 %v1393_v10  ;;  %v1574_v43 = vunpack.c.l.bf16 %v1289_v17 }
 0x1b4   : > { %v1629_v49 = vrot.slane %v1589_v42, 1  ;;  %v1701_v36 = vunpack.c.l.bf16 %v1548_v18  ;;  %v1867_v5 = vmul.f32 0.5, %v4019_v58  ;;  %v1573_v14 = vunpack.c.l.bf16 %v1288_v9 }
 0x1b5   : > { %v1630_v56 = vrot.slane %v1590_v40, 1  ;;  %v1702_v16 = vunpack.c.l.bf16 %v1549_v53  ;;  %v1703_v8 = vunpack.c.l.bf16 %v1550_v41  ;;  %v2994_v23 = vpop.eup %2993  ;;  %v1868_v32 = vmul.f32 0.5, %v4024_v37 }
 0x1b6   : > { %v1677_v20 = vadd.f32 %v1629_v49, %v1572_v6  ;;  %v1764_v12 = vrot.slane %v1701_v36, 2  ;;  %v2996_v13 = vpop.eup %2995  ;;  %v1938_v22 = vadd.f32 1.0, %v2994_v23 }
 0x1b7   : > { %v1631_v51 = vsel %vm1607_vm8, %v1629_v49, %v1630_v56  ;;  %v1679_v2 = vadd.f32 %v1630_v56, %v1574_v43  ;;  %v1765_v35 = vrot.slane %v1702_v16, 2  ;;  %v2998_v28 = vpop.eup %2997  ;;  %v1939_v4 = vadd.f32 1.0, %v2996_v13 }
 0x1b8   : > { %v1678_v39 = vadd.f32 %v1631_v51, %v1573_v14  ;;  %v1767_v63 = vrot.slane %v1703_v8, 2  ;;  %v1814_v25 = vadd.f32 %v1764_v12, %v1677_v20  ;;  %v1940_v48 = vadd.f32 1.0, %v2998_v28 }
 0x1b9   : > { %v1962_v29 = vmul.f32 %v1938_v22, %v1866_v11  ;;  %v1766_v58 = vsel %vm1728_vm9, %v1764_v12, %v1765_v35  ;;  %v1963_v45 = vmul.f32 %v1939_v4, %v1867_v5  ;;  %v4074_v12 = vld [vmem:[%s4138_s8] ss:$0 sm:$0xff] }
 0x1ba   : > { %v1768_v3 = vsel %vm1728_vm9, %v1765_v35, %v1767_v63  ;;  %v1815_v21 = vadd.f32 %v1766_v58, %v1678_v39  ;;  %v1845_v52 = vadd.f32 %v4009_v34, %v1814_v25  ;;  %v1964_v24 = vmul.f32 %v1940_v48, %v1868_v32 }
 0x1bb   : > { %v1816_v31 = vadd.f32 %v1768_v3, %v1679_v2  ;;  %v1980_v19 = vpack.c.bf16 %v1963_v45, %v1962_v29 }
 0x1bc   : > { %v1846_v46 = vadd.f32 %v4009_v34, %v1815_v21  ;;  %v1893_v62 = vmul.f32 0.70710677, %v1845_v52  ;;  %v1981_v27 = vpack.c.bf16 %v1964_v24, %v1964_v24  ;;  %v1869_v55 = vmul.f32 0.5, %v1845_v52 }
 0x1bd   : > { %v1847_v33 = vadd.f32 %v4009_v34, %v1816_v31  ;;  %v2088_v37 = vshrl.u32 %v1980_v19, 16  ;;  %v2091_v50 = vshll.u32 %v1980_v19, 16 }
 0x1be   : > { %v1894_v60 = vmul.f32 0.70710677, %v1846_v46  ;;  %v2096_v38 = vshrl.u32 %v1981_v27, 16  ;;  %v2099_v30 = vshll.u32 %v1981_v27, 16  ;;  %2999 = verf.f32 %v1893_v62 }
 0x1bf   : > { %v1895_v54 = vmul.f32 0.70710677, %v1847_v33  ;;  %v2090_v1 = vrot.slane %v2088_v37, 3  ;;  %v2093_v57 = vrot.slane %v2091_v50, 4  ;;  %v1870_v59 = vmul.f32 0.5, %v1846_v46 }
 0x1c0   : > { %v2098_v0 = vrot.slane %v2096_v38, 3  ;;  %v2101_v61 = vrot.slane %v2099_v30, 4  ;;  %3001 = verf.f32 %v1894_v60  ;;  %v1871_v9 = vmul.f32 0.5, %v1847_v33 }
 0x1c1   : > { %v2094_v15 = vor.u32 %v2093_v57, %v2090_v1  ;;  %3003 = verf.f32 %v1895_v54 }
 0x1c2   : > { %v2102_v7 = vor.u32 %v2101_v61, %v2098_v0 }
 0x1c4   : > { %v2103_v44 = vsel %vm1984_vm11, %v2094_v15, %v2102_v7 }
 0x1c5   : > { %2845 = vmatprep.mubr.bf16.mxu1 %v2103_v44 }
 0x1cb   : > { %v3000_v26 = vpop.eup %2999 }
 0x1cc   : > { %v1941_v17 = vadd.f32 1.0, %v3000_v26 }
 0x1cd   : > { %v3002_v34 = vpop.eup %3001 }
 0x1ce   : > { %v3004_v10 = vpop.eup %3003  ;;  %v1942_v47 = vadd.f32 1.0, %v3002_v34  ;;  %v1965_v6 = vmul.f32 %v1941_v17, %v1869_v55 }
 0x1cf   : > { %v1943_v18 = vadd.f32 1.0, %v3004_v10 }
 0x1d0   : > { %v1966_v42 = vmul.f32 %v1942_v47, %v1870_v59 }
 0x1d1   : > { %v1967_v53 = vmul.f32 %v1943_v18, %v1871_v9 }
 0x1d2   : > { %v1982_v41 = vpack.c.bf16 %v1966_v42, %v1965_v6 }
 0x1d3   : > { %v1983_v40 = vpack.c.bf16 %v1967_v53, %v1967_v53 }
 0x1d4   : > { %v2105_v11 = vshrl.u32 %v1982_v41, 16  ;;  %v2108_v49 = vshll.u32 %v1982_v41, 16 }
 0x1d5   : > { %v2113_v36 = vshrl.u32 %v1983_v40, 16  ;;  %v2116_v43 = vshll.u32 %v1983_v40, 16 }
 0x1d6   : > { %v2107_v56 = vrot.slane %v2105_v11, 3  ;;  %v2110_v16 = vrot.slane %v2108_v49, 4 }
 0x1d7   : > { %v2115_v8 = vrot.slane %v2113_v36, 3  ;;  %v2118_v23 = vrot.slane %v2116_v43, 4 }
 0x1d8   : > { %v2111_v5 = vor.u32 %v2110_v16, %v2107_v56 }
 0x1d9   : > { %v2119_v14 = vor.u32 %v2118_v23, %v2115_v8 }
 0x1db   : > { %v2120_v20 = vsel %vm1984_vm11, %v2111_v5, %v2119_v14 }
 0x1dc   : > { %2846 = vmatmul.mubr.bf16.gmra.mxu1 %v2120_v20 }
 0x21e   : > { %v2835_v13 = vpop.f32.mrf.mxu1 }
 0x21f   : > { %v2243_v22 = vadd.f32 %v2835_v13, %v4074_v12 }
 0x220   : > { %v2234_v51 = vpop.f32.mrf.mxu1 }
 0x221   : > { %v2315_v2 = vmul.f32 0.70710677, %v2243_v22  ;;  %v2235_v35 = vadd.f32 %v4074_v12, %v2234_v51  ;;  %v2299_v58 = vmul.f32 0.5, %v2243_v22 }
 0x222   : > { %v2836_v28 = vpop.f32.mrf.mxu1 }
 0x223   : > { %3005 = verf.f32 %v2315_v2  ;;  %v2313_v4 = vmul.f32 0.70710677, %v2235_v35  ;;  %v2246_v39 = vadd.f32 %v2836_v28, %v4074_v12  ;;  %v2297_v52 = vmul.f32 0.5, %v2235_v35 }
 0x224   : > { %v2237_v63 = vpop.f32.mrf.mxu1 }
 0x225   : > { %3007 = verf.f32 %v2313_v4  ;;  %v2316_v25 = vmul.f32 0.70710677, %v2246_v39  ;;  %v2238_v32 = vadd.f32 %v4074_v12, %v2237_v63  ;;  %v2300_v46 = vmul.f32 0.5, %v2246_v39 }
 0x227   : > { %3009 = verf.f32 %v2316_v25  ;;  %v2314_v48 = vmul.f32 0.70710677, %v2238_v32  ;;  %v2298_v37 = vmul.f32 0.5, %v2238_v32 }
 0x229   : > { %3011 = verf.f32 %v2314_v48 }
 0x230   : > { %v3006_v29 = vpop.eup %3005 }
 0x231   : > { %v2347_v45 = vadd.f32 1.0, %v3006_v29 }
 0x232   : > { %v3008_v3 = vpop.eup %3007 }
 0x233   : > { %v2363_v21 = vmul.f32 %v2347_v45, %v2299_v58  ;;  %v2345_v24 = vadd.f32 1.0, %v3008_v3 }
 0x234   : > { %v3010_v31 = vpop.eup %3009 }
 0x235   : > { %2379 = vst [vmem:[%s4085_s25 + $0x10] sm:$0xff] %v2363_v21  ;;  %v2361_v19 = vmul.f32 %v2345_v24, %v2297_v52  ;;  %v2348_v62 = vadd.f32 1.0, %v3010_v31 }
 0x236   : > { %v3012_v27 = vpop.eup %3011 }
 0x237   : > { %2377 = vst [vmem:[%s4085_s25] sm:$0xff] %v2361_v19  ;;  %v2364_v33 = vmul.f32 %v2348_v62, %v2300_v46  ;;  %v2346_v50 = vadd.f32 1.0, %v3012_v27 }
 0x239   : > { %2380 = vst [vmem:[%s4085_s25 + $0x18] sm:$0xff] %v2364_v33  ;;  %v2362_v60 = vmul.f32 %v2346_v50, %v2298_v37 }
 0x23b   : > { %2378 = vst [vmem:[%s4085_s25 + $0x8] sm:$0xff] %v2362_v60 }
 0x247   : > { %v2839_v38 = vpop.f32.mrf.mxu1 }
 0x248   : > { %v2259_v30 = vadd.f32 %v2839_v38, %v4074_v12 }
 0x249   : > { %v2250_v54 = vpop.f32.mrf.mxu1 }
 0x24a   : > { %v2319_v1 = vmul.f32 0.70710677, %v2259_v30  ;;  %v2251_v57 = vadd.f32 %v4074_v12, %v2250_v54  ;;  %v2303_v17 = vmul.f32 0.5, %v2259_v30 }
 0x24b   : > { %v2840_v0 = vpop.f32.mrf.mxu1 }
 0x24c   : > { %3013 = verf.f32 %v2319_v1  ;;  %v2317_v61 = vmul.f32 0.70710677, %v2251_v57  ;;  %v2262_v15 = vadd.f32 %v2840_v0, %v4074_v12  ;;  %v2301_v9 = vmul.f32 0.5, %v2251_v57 }
 0x24d   : > { %v2253_v7 = vpop.f32.mrf.mxu1 }
 0x24e   : > { %3015 = verf.f32 %v2317_v61  ;;  %v2320_v44 = vmul.f32 0.70710677, %v2262_v15  ;;  %v2254_v26 = vadd.f32 %v4074_v12, %v2253_v7  ;;  %v2304_v53 = vmul.f32 0.5, %v2262_v15 }
 0x250   : > { %3017 = verf.f32 %v2320_v44  ;;  %v2318_v34 = vmul.f32 0.70710677, %v2254_v26  ;;  %v2302_v49 = vmul.f32 0.5, %v2254_v26 }
 0x252   : > { %3019 = verf.f32 %v2318_v34 }
 0x259   : > { %v3014_v55 = vpop.eup %3013 }
 0x25a   : > { %v2351_v10 = vadd.f32 1.0, %v3014_v55 }
 0x25b   : > { %v3016_v59 = vpop.eup %3015 }
 0x25c   : > { %v2367_v47 = vmul.f32 %v2351_v10, %v2303_v17  ;;  %v2349_v18 = vadd.f32 1.0, %v3016_v59 }
 0x25d   : > { %v3018_v6 = vpop.eup %3017 }
 0x25e   : > { %2383 = vst [vmem:[%s4085_s25 + $0x30] sm:$0xff] %v2367_v47  ;;  %v2365_v42 = vmul.f32 %v2349_v18, %v2301_v9  ;;  %v2352_v41 = vadd.f32 1.0, %v3018_v6 }
 0x25f   : > { %v3020_v40 = vpop.eup %3019 }
 0x260   : > { %2381 = vst [vmem:[%s4085_s25 + $0x20] sm:$0xff] %v2365_v42  ;;  %v2368_v11 = vmul.f32 %v2352_v41, %v2304_v53  ;;  %v2350_v36 = vadd.f32 1.0, %v3020_v40 }
 0x262   : > { %2384 = vst [vmem:[%s4085_s25 + $0x38] sm:$0xff] %v2368_v11  ;;  %v2366_v43 = vmul.f32 %v2350_v36, %v2302_v49 }
 0x264   : > { %2382 = vst [vmem:[%s4085_s25 + $0x28] sm:$0xff] %v2366_v43 }
 0x26f   : > { %v2843_v56 = vpop.f32.mrf.mxu1 }
 0x270   : > { %v2275_v16 = vadd.f32 %v2843_v56, %v4074_v12 }
 0x271   : > { %v2266_v8 = vpop.f32.mrf.mxu1 }
 0x272   : > { %v2323_v23 = vmul.f32 0.70710677, %v2275_v16  ;;  %v2267_v5 = vadd.f32 %v4074_v12, %v2266_v8  ;;  %v2307_v4 = vmul.f32 0.5, %v2275_v16 }
 0x273   : > { %v2844_v14 = vpop.f32.mrf.mxu1 }
 0x274   : > { %3021 = verf.f32 %v2323_v23  ;;  %v2321_v20 = vmul.f32 0.70710677, %v2267_v5  ;;  %v2278_v13 = vadd.f32 %v2844_v14, %v4074_v12  ;;  %v2305_v32 = vmul.f32 0.5, %v2267_v5 }
 0x275   : > { %v2269_v22 = vpop.f32.mrf.mxu1 }
 0x276   : > { %3023 = verf.f32 %v2321_v20  ;;  %v2324_v51 = vmul.f32 0.70710677, %v2278_v13  ;;  %v2270_v2 = vadd.f32 %v4074_v12, %v2269_v22  ;;  %v2308_v45 = vmul.f32 0.5, %v2278_v13 }
 0x278   : > { %3025 = verf.f32 %v2324_v51  ;;  %v2322_v35 = vmul.f32 0.70710677, %v2270_v2  ;;  %v2306_v24 = vmul.f32 0.5, %v2270_v2 }
 0x27a   : > { %3027 = verf.f32 %v2322_v35 }
 0x281   : > { %v3022_v28 = vpop.eup %3021 }
 0x282   : > { %v2355_v39 = vadd.f32 1.0, %v3022_v28 }
 0x283   : > { %v3024_v63 = vpop.eup %3023 }
 0x284   : > { %v2371_v25 = vmul.f32 %v2355_v39, %v2307_v4  ;;  %v2353_v48 = vadd.f32 1.0, %v3024_v63 }
 0x285   : > { %v3026_v29 = vpop.eup %3025 }
 0x286   : > { %2387 = vst [vmem:[%s4085_s25 + $0x50] sm:$0xff] %v2371_v25  ;;  %v2369_v58 = vmul.f32 %v2353_v48, %v2305_v32  ;;  %v2356_v3 = vadd.f32 1.0, %v3026_v29 }
 0x287   : > { %v3028_v21 = vpop.eup %3027 }
 0x288   : > { %2385 = vst [vmem:[%s4085_s25 + $0x40] sm:$0xff] %v2369_v58  ;;  %v2372_v52 = vmul.f32 %v2356_v3, %v2308_v45  ;;  %v2354_v31 = vadd.f32 1.0, %v3028_v21 }
 0x28a   : > { %2388 = vst [vmem:[%s4085_s25 + $0x58] sm:$0xff] %v2372_v52  ;;  %v2370_v19 = vmul.f32 %v2354_v31, %v2306_v24 }
 0x28c   : > { %2386 = vst [vmem:[%s4085_s25 + $0x48] sm:$0xff] %v2370_v19 }
 0x29c   : > { %v2847_v46 = vpop.f32.mrf.mxu1 }
 0x29d   : > { %v2291_v62 = vadd.f32 %v2847_v46, %v4074_v12 }
 0x29e   : > { %v2282_v27 = vpop.f32.mrf.mxu1 }
 0x29f   : > { %v2327_v33 = vmul.f32 0.70710677, %v2291_v62  ;;  %v2283_v37 = vadd.f32 %v4074_v12, %v2282_v27  ;;  %v2311_v61 = vmul.f32 0.5, %v2291_v62 }
 0x2a0   : > { %v2848_v50 = vpop.f32.mrf.mxu1 }
 0x2a1   : > { %3029 = verf.f32 %v2327_v33  ;;  %v2325_v60 = vmul.f32 0.70710677, %v2283_v37  ;;  %v2294_v38 = vadd.f32 %v2848_v50, %v4074_v12  ;;  %v2309_v26 = vmul.f32 0.5, %v2283_v37 }
 0x2a2   : > { %v2285_v30 = vpop.f32.mrf.mxu1 }
 0x2a3   : > { %3031 = verf.f32 %v2325_v60  ;;  %v2328_v54 = vmul.f32 0.70710677, %v2294_v38  ;;  %v2286_v1 = vadd.f32 %v4074_v12, %v2285_v30  ;;  %v2312_v10 = vmul.f32 0.5, %v2294_v38 }
 0x2a5   : > { %3033 = verf.f32 %v2328_v54  ;;  %v2326_v57 = vmul.f32 0.70710677, %v2286_v1  ;;  %v2310_v9 = vmul.f32 0.5, %v2286_v1 }
 0x2a7   : > { %3035 = verf.f32 %v2326_v57 }
 0x2ae   : > { %v3030_v0 = vpop.eup %3029 }
 0x2af   : > { %v2359_v15 = vadd.f32 1.0, %v3030_v0 }
 0x2b0   : > { %v3032_v7 = vpop.eup %3031 }
 0x2b1   : > { %v2375_v44 = vmul.f32 %v2359_v15, %v2311_v61  ;;  %v2357_v34 = vadd.f32 1.0, %v3032_v7 }
 0x2b2   : > { %v3034_v55 = vpop.eup %3033 }
 0x2b3   : > { %2391 = vst [vmem:[%s4085_s25 + $0x70] sm:$0xff] %v2375_v44  ;;  %v2373_v17 = vmul.f32 %v2357_v34, %v2309_v26  ;;  %v2360_v59 = vadd.f32 1.0, %v3034_v55 }
 0x2b4   : > { %v3036_v47 = vpop.eup %3035 }
 0x2b5   : > { %2389 = vst [vmem:[%s4085_s25 + $0x60] sm:$0xff] %v2373_v17  ;;  %v2376_v12 = vmul.f32 %v2360_v59, %v2312_v10  ;;  %v2358_v18 = vadd.f32 1.0, %v3036_v47 }
 0x2b7   : > { %2392 = vst [vmem:[%s4085_s25 + $0x78] sm:$0xff] %v2376_v12  ;;  %v2374_v6 = vmul.f32 %v2358_v18, %v2310_v9 }
 0x2b9   : > { %2390 = vst [vmem:[%s4085_s25 + $0x68] sm:$0xff] %v2374_v6 }
 0x2ba PF: > { %s19_s13 = sadd.s32 1, %s3080_s13   ;;  %s4155_s30 = smov %s3072_s11 }
 0x2bb   : > { %p16_p13 = scmp.ge.s32.totalorder %s19_s13, 6   ;;  %s4156_s10 = smov %s3076_s12 }
 0x2bc   : > { %s4157_s11 = smov %s4160_s14  ;;  %s4158_s12 = smov %s4164_s15 }
 0x2bd   :  { %18 = sbr.rel (!%p16_p13) target bundleno = 3 (0x3), region = 94 }

</bundles_post_ra>
